<compile_context>
chip_gen: v7x
topology: tpu7x:2x2x1
jax: 0.10.0
libtpu: 0.0.40
codegen_flags: <defaults>
</compile_context>

<pallas_src>
import functools
import math

import numpy as np
import jax
import jax.numpy as jnp
from jax.experimental import pallas as pl
from jax.experimental.pallas import tpu as pltpu  # noqa: F401  (TPU backend)

BN_EPS = 1e-5
LANE = 128


def _round_up(x, m):
    return ((x + m - 1) // m) * m


def _out_dim(size, k, s):
    return (size - k) // s + 1


def _full(shape):
    return pl.BlockSpec(shape, lambda i: (0,) * len(shape))


# ----------------------------------------------------------------------------
# Pallas kernels
# ----------------------------------------------------------------------------
def _conv_bn_relu_pool_kernel(w_ref, p_ref, gb_ref, o_ref, *,
                              true_r, r_pad, n_windows, win_size):
    """Fused Conv2d (im2col matmul) + train-mode BN + ReLU + MaxPool2d.

    w_ref:  (Cout, K)     flattened conv weight, bf16    K = Cin*kh*kw
    p_ref:  (K, R_pad)    im2col patches, bf16.  Columns = n_windows slabs of
                          win_size (one per pooling-window slot, zero padded)
                          + one slab of pool-dropped positions (BN stats only).
    gb_ref: (Cout, 2)     col 0 = gamma, col 1 = beta (f32)
    o_ref:  (Cout, win_size) f32, lane-dense pooled output
    """
    y = jnp.dot(w_ref[...], p_ref[...], preferred_element_type=jnp.float32)

    # Train-mode batch statistics per channel over the TRUE N*Ho*Wo positions.
    # Pad columns are exactly zero pre-BN (zero patches, no bias).
    inv_r = 1.0 / true_r
    mean = jnp.sum(y, axis=1, keepdims=True) * inv_r
    d = y - mean
    # Shifted two-pass variance; each zero pad column contributes mean^2 to
    # sum(d*d) -> subtract it exactly.  Clamp guards residual f32 round-off.
    var = (jnp.sum(d * d, axis=1, keepdims=True)
           - (r_pad - true_r) * (mean * mean)) * inv_r
    var = jnp.maximum(var, 0.0)

    gamma = gb_ref[:, 0:1]
    beta = gb_ref[:, 1:2]
    scale = gamma * jax.lax.rsqrt(var + BN_EPS)      # rsqrt -> EUP (free slot)
    shift = beta - mean * scale
    z = jnp.maximum(y * scale + shift, 0.0)          # BN + ReLU, f32 (v5e-safe)

    # Floor-mode MaxPool: max over the n_windows contiguous 128-aligned slabs.
    pooled = z[:, 0:win_size]
    for p in range(1, n_windows):
        pooled = jnp.maximum(pooled, z[:, p * win_size:(p + 1) * win_size])
    o_ref[...] = pooled.astype(o_ref.dtype)


def _fc_stack_kernel(x_ref, w1_ref, w234_ref, b_ref, o_ref):
    """Fused fc1 -> fc2 -> fc3 -> output_exo (ReLU on the first three).

    x_ref:    (N, Fp)      features, bf16 (zero padded to Fp lanes)
    w1_ref:   (Fp, D)      fc1 weight, bf16 (zero padded rows)
    w234_ref: (3, D, D)    fc2, fc3, output_exo weights (last zero padded), bf16
    b_ref:    (4, D)       all biases packed, f32
    o_ref:    (N, D)       f32 logits (first output_size columns are valid)
    """
    def act(y):
        return jnp.maximum(y, 0.0).astype(jnp.bfloat16)

    h = act(jnp.dot(x_ref[...], w1_ref[...],
                    preferred_element_type=jnp.float32) + b_ref[0:1, :])
    h = act(jnp.dot(h, w234_ref[0],
                    preferred_element_type=jnp.float32) + b_ref[1:2, :])
    h = act(jnp.dot(h, w234_ref[1],
                    preferred_element_type=jnp.float32) + b_ref[2:3, :])
    o_ref[...] = (jnp.dot(h, w234_ref[2],
                          preferred_element_type=jnp.float32) + b_ref[3:4, :])


# ----------------------------------------------------------------------------
# Pallas wrappers (tiny shapes -> one full-array block per call)
# ----------------------------------------------------------------------------
def conv_bn_relu_pool(w_flat, patches, gb, *, true_r, n_windows, win_size):
    Cout, K = w_flat.shape
    R = patches.shape[1]
    kern = functools.partial(_conv_bn_relu_pool_kernel, true_r=true_r, r_pad=R,
                             n_windows=n_windows, win_size=win_size)
    return pl.pallas_call(
        kern,
        out_shape=jax.ShapeDtypeStruct((Cout, win_size), jnp.float32),
        grid=(1,),
        in_specs=[_full((Cout, K)), _full((K, R)), _full((Cout, 2))],
        out_specs=_full((Cout, win_size)),
    )(w_flat, patches, gb)


def fc_stack(feat, p_fc1, p_fc2, p_fc3, p_out):
    N, F = feat.shape
    D = p_fc2[0].shape[0]                      # units[2]
    out_size = p_out[0].shape[1]
    assert out_size <= D, "fused fc-stack assumes output_size <= units[2]"
    Fp = _round_up(F, LANE)

    x = jnp.pad(feat, ((0, 0), (0, Fp - F))).astype(jnp.bfloat16)
    w1 = jnp.pad(p_fc1[0], ((0, Fp - F), (0, 0))).astype(jnp.bfloat16)

    def pad_w(wm):                              # pad cols to D, cast bf16
        return jnp.pad(wm, ((0, 0), (0, D - wm.shape[1]))).astype(jnp.bfloat16)

    def pad_b(b):
        return jnp.pad(b, (0, D - b.shape[0])).astype(jnp.float32)

    w234 = jnp.stack([pad_w(p_fc2[0]), pad_w(p_fc3[0]), pad_w(p_out[0])])
    b_all = jnp.stack([pad_b(p_fc1[1]), pad_b(p_fc2[1]),
                       pad_b(p_fc3[1]), pad_b(p_out[1])])

    out = pl.pallas_call(
        _fc_stack_kernel,
        out_shape=jax.ShapeDtypeStruct((N, D), jnp.float32),
        grid=(1,),
        in_specs=[_full(x.shape), _full(w1.shape),
                  _full(w234.shape), _full(b_all.shape)],
        out_specs=_full((N, D)),
    )(x, w1, w234, b_all)
    return out[:, :out_size]


# ----------------------------------------------------------------------------
# Plain-JAX glue: build lane-dense, pool-slab-ordered im2col patches
# ----------------------------------------------------------------------------
def conv_block(a, params, *, kh, kw, stride, pkh, pkw, pstride):
    """Conv2d(stride) -> BatchNorm2d(train) -> ReLU -> MaxPool2d, channels-first.

    a: (Cin, N, H, W)  ->  (Cout, N, Hp, Wp) float32
    """
    w, gamma, beta = params                    # w: (Cout, Cin, kh, kw)
    Cout = w.shape[0]
    C, N, H, W = a.shape
    Ho, Wo = _out_dim(H, kh, stride), _out_dim(W, kw, stride)
    Hp, Wp = _out_dim(Ho, pkh, pstride), _out_dim(Wo, pkw, pstride)
    assert pkh <= pstride and pkw <= pstride, "non-overlapping pool windows assumed"
    K = C * kh * kw
    P = pkh * pkw
    npool = N * Hp * Wp
    S = _round_up(npool, LANE)                 # per-pool-window column slab

    # im2col taps over every conv output position; rows in PyTorch (c, i, j)
    # order so w.reshape(Cout, K) lines up.
    taps = []
    for i in range(kh):
        for j in range(kw):
            taps.append(a[:, :,
                          i:i + stride * (Ho - 1) + 1:stride,
                          j:j + stride * (Wo - 1) + 1:stride])
    p4 = jnp.stack(taps, axis=1).reshape(K, N, Ho, Wo).astype(jnp.bfloat16)

    # One column slab per pooling-window slot (pi, pj); each zero-padded to S
    # lanes so the in-kernel pool is a max over 128-aligned contiguous slices.
    slabs = []
    for pi in range(pkh):
        for pj in range(pkw):
            g = p4[:, :,
                   pi:pi + pstride * (Hp - 1) + 1:pstride,
                   pj:pj + pstride * (Wp - 1) + 1:pstride].reshape(K, npool)
            slabs.append(jnp.pad(g, ((0, 0), (0, S - npool))))

    # Conv positions dropped by floor-mode pooling still feed BN statistics:
    # append them (zero padded) after the pooling slabs.
    ho = np.arange(Ho)
    wo = np.arange(Wo)
    cov_h = (ho % pstride < pkh) & (ho < pstride * (Hp - 1) + pkh)
    cov_w = (wo % pstride < pkw) & (wo < pstride * (Wp - 1) + pkw)
    lo_h, lo_w = np.nonzero(~(cov_h[:, None] & cov_w[None, :]))
    if lo_h.size:
        lf = p4[:, :, lo_h, lo_w].reshape(K, N * lo_h.size)
        pad = _round_up(lf.shape[1], LANE) - lf.shape[1]
        slabs.append(jnp.pad(lf, ((0, 0), (0, pad))))

    patches = jnp.concatenate(slabs, axis=1)   # (K, R_pad), R_pad % 128 == 0
    w_flat = w.reshape(Cout, K).astype(jnp.bfloat16)
    gb = jnp.stack([gamma, beta], axis=1)      # (Cout, 2) f32

    pooled = conv_bn_relu_pool(w_flat, patches, gb,
                               true_r=N * Ho * Wo, n_windows=P, win_size=S)
    return pooled[:, :npool].reshape(Cout, N, Hp, Wp)


# ----------------------------------------------------------------------------
# Model
# ----------------------------------------------------------------------------
def calc_fc_input_size(units1, H, W, exo_flat):
    h, w = _out_dim(H, 3, 2), _out_dim(W, 8, 2)   # input conv (3,8)/2
    h, w = _out_dim(h, 2, 2), _out_dim(w, 2, 2)   # pool 2x2 /2
    h, w = _out_dim(h, 1, 2), _out_dim(w, 8, 2)   # h1 conv (1,8)/2
    h, w = _out_dim(h, 1, 2), _out_dim(w, 2, 2)   # pool (1,2) /2
    h, w = _out_dim(h, 1, 2), _out_dim(w, 8, 2)   # h2 conv (1,8)/2
    h, w = _out_dim(h, 1, 2), _out_dim(w, 2, 2)   # pool (1,2) /2
    return units1 * h * w + exo_flat


def _xavier(key, shape, fan_in, fan_out):
    bound = (6.0 / (fan_in + fan_out)) ** 0.5
    return jax.random.uniform(key, shape, jnp.float32, -bound, bound)


def init_params(key, input_channels, units, output_size, H, W, exo_flat):
    ks = jax.random.split(key, 14)
    u0, u1, u2 = units

    def conv_params(kh_, kw_, cin, cout, k_w):
        w = _xavier(k_w, (cout, cin, kh_, kw_), cin * kh_ * kw_, cout * kh_ * kw_)
        gamma = jnp.ones((cout,), jnp.float32)     # BatchNorm2d defaults
        beta = jnp.zeros((cout,), jnp.float32)
        # Conv bias intentionally omitted: train-mode BN batch mean absorbs a
        # per-channel pre-BN bias exactly, so it is dead work.
        return (w, gamma, beta)

    def linear_params(din, dout, k_w, k_b):
        w = _xavier(k_w, (din, dout), din, dout)   # stored pre-transposed (Din, Dout)
        b = jax.random.uniform(k_b, (dout,), jnp.float32, -0.1, 0.1)
        return (w, b)

    fc_in = calc_fc_input_size(u1, H, W, exo_flat)
    return {
        "input": conv_params(3, 8, input_channels, u0, ks[0]),
        "h1": conv_params(1, 8, u0, u1, ks[2]),
        "h2": conv_params(1, 8, u1, u1, ks[4]),
        "fc1": linear_params(fc_in, u2, ks[6], ks[7]),
        "fc2": linear_params(u2, u2, ks[8], ks[9]),
        "fc3": linear_params(u2, u2, ks[10], ks[11]),
        "output": linear_params(u2, output_size, ks[12], ks[13]),
    }


def forward(x, exo, params):
    # NCHW -> (C, N, H, W) channels-as-sublane layout for the conv kernels.
    # TODO(synk): fold this transpose into the first im2col gather.
    a = x.transpose(1, 0, 2, 3)
    a = conv_block(a, params["input"], kh=3, kw=8, stride=2, pkh=2, pkw=2, pstride=2)
    a = conv_block(a, params["h1"], kh=1, kw=8, stride=2, pkh=1, pkw=2, pstride=2)
    a = conv_block(a, params["h2"], kh=1, kw=8, stride=2, pkh=1, pkw=2, pstride=2)
    # Flatten in PyTorch (N, C*H*W) order, concat the flattened exo features.
    C, N, Hp, Wp = a.shape
    cnn_flat = a.transpose(1, 0, 2, 3).reshape(N, C * Hp * Wp)
    exo_flat = exo.reshape(exo.shape[0], -1).astype(cnn_flat.dtype)
    feat = jnp.concatenate([cnn_flat, exo_flat], axis=1)
    # fc1 -> fc2 -> fc3 -> output_exo fused into one Pallas kernel.
    return fc_stack(feat, params["fc1"], params["fc2"], params["fc3"],
                    params["output"])


# ----------------------------------------------------------------------------
if __name__ == "__main__":
    key = jax.random.PRNGKey(0)
    k_params, k_x, k_exo = jax.random.split(key, 3)

    input_channels = 2
    units = [8, 16, 32]
    output_size = 4
    N, H, W = 2, 16, 256      # width must survive three (.,8)-stride-2 convs + pools
    exo_shape = (N, 6)
    exo_feat = math.prod(exo_shape[1:])

    params = init_params(k_params, input_channels, units, output_size, H, W, exo_feat)
    x = jax.random.normal(k_x, (N, input_channels, H, W), jnp.float32)
    exo = jax.random.normal(k_exo, exo_shape, jnp.float32)

    fwd = jax.jit(lambda xx, ee: forward(xx, ee, params))
    out = jax.block_until_ready(fwd(x, exo))

    assert out.shape == (N, output_size), out.shape
    assert bool(jnp.all(jnp.isfinite(out)))
    print("KERNEL_OK")
</pallas_src>

<mosaic_0001>
module attributes {stable_mosaic.version = 11 : i64} {
  func.func @_conv_bn_relu_pool_kernel(%arg0: i32, %arg1: memref<8x48xbf16, #tpu.memory_space<vmem>>, %arg2: memref<48x1920xbf16, #tpu.memory_space<vmem>>, %arg3: memref<8x2xf32, #tpu.memory_space<vmem>>, %arg4: memref<8x384xf32, #tpu.memory_space<vmem>>) attributes {dimension_semantics = [#tpu.dimension_semantics<arbitrary>], iteration_bounds = array<i64: 1>, scalar_prefetch = 0 : i64, scratch_operands = 0 : i64, tpu.core_type = #tpu.core_type<tc>, window_params = [{pipeline_mode = #tpu.pipeline_mode<synchronous>, transform_indices = @transform_0, window_bounds = array<i64: 8, 48>}, {pipeline_mode = #tpu.pipeline_mode<synchronous>, transform_indices = @transform_1, window_bounds = array<i64: 48, 1920>}, {pipeline_mode = #tpu.pipeline_mode<synchronous>, transform_indices = @transform_2, window_bounds = array<i64: 8, 2>}, {pipeline_mode = #tpu.pipeline_mode<synchronous>, transform_indices = @transform_3, window_bounds = array<i64: 8, 384>}]} {
    %c0 = arith.constant 0 : index
    %c0_0 = arith.constant 0 : index
    %0 = vector.load %arg1[%c0, %c0_0] : memref<8x48xbf16, #tpu.memory_space<vmem>>, vector<8x48xbf16>
    %c0_1 = arith.constant 0 : index
    %c0_2 = arith.constant 0 : index
    %1 = vector.load %arg2[%c0_1, %c0_2] : memref<48x1920xbf16, #tpu.memory_space<vmem>>, vector<48x1920xbf16>
    %cst = arith.constant dense<0.000000e+00> : vector<8x1920xf32>
    %2 = tpu.matmul %0, %1, %cst {dimension_numbers = #tpu.dot_dimension_numbers<[1], [0], [0], [1], [0, 0, 1, 1], [], []>} : vector<8x48xbf16>, vector<48x1920xbf16>, vector<8x1920xf32> -> vector<8x1920xf32>
    %cst_3 = arith.constant dense<0.000000e+00> : vector<8xf32>
    %3 = vector.multi_reduction <add>, %2, %cst_3 [1] : vector<8x1920xf32> to vector<8xf32>
    %4 = vector.shape_cast %3 : vector<8xf32> to vector<8x1xf32>
    %cst_4 = arith.constant 5.71428565E-4 : f32
    %5 = vector.broadcast %cst_4 : f32 to vector<8x1xf32>
    %6 = arith.mulf %4, %5 : vector<8x1xf32>
    %7 = vector.broadcast %6 : vector<8x1xf32> to vector<8x1920xf32>
    %8 = arith.subf %2, %7 : vector<8x1920xf32>
    %9 = arith.mulf %8, %8 : vector<8x1920xf32>
    %cst_5 = arith.constant dense<0.000000e+00> : vector<8xf32>
    %10 = vector.multi_reduction <add>, %9, %cst_5 [1] : vector<8x1920xf32> to vector<8xf32>
    %11 = vector.shape_cast %10 : vector<8xf32> to vector<8x1xf32>
    %12 = arith.mulf %6, %6 : vector<8x1xf32>
    %cst_6 = arith.constant 1.700000e+02 : f32
    %13 = vector.broadcast %cst_6 : f32 to vector<8x1xf32>
    %14 = arith.mulf %13, %12 : vector<8x1xf32>
    %15 = arith.subf %11, %14 : vector<8x1xf32>
    %cst_7 = arith.constant 5.71428565E-4 : f32
    %16 = vector.broadcast %cst_7 : f32 to vector<8x1xf32>
    %17 = arith.mulf %15, %16 : vector<8x1xf32>
    %cst_8 = arith.constant 0.000000e+00 : f32
    %18 = vector.broadcast %cst_8 : f32 to vector<8x1xf32>
    %19 = arith.maximumf %17, %18 : vector<8x1xf32>
    %c0_9 = arith.constant 0 : index
    %c0_10 = arith.constant 0 : index
    %20 = vector.load %arg3[%c0_9, %c0_10] : memref<8x2xf32, #tpu.memory_space<vmem>>, vector<8x1xf32>
    %c0_11 = arith.constant 0 : index
    %c1 = arith.constant 1 : index
    %21 = vector.load %arg3[%c0_11, %c1] : memref<8x2xf32, #tpu.memory_space<vmem>>, vector<8x1xf32>
    %cst_12 = arith.constant 9.99999974E-6 : f32
    %22 = vector.broadcast %cst_12 : f32 to vector<8x1xf32>
    %23 = arith.addf %19, %22 : vector<8x1xf32>
    %24 = math.rsqrt %23 : vector<8x1xf32>
    %25 = arith.mulf %20, %24 : vector<8x1xf32>
    %26 = arith.mulf %6, %25 : vector<8x1xf32>
    %27 = arith.subf %21, %26 : vector<8x1xf32>
    %28 = vector.broadcast %25 : vector<8x1xf32> to vector<8x1920xf32>
    %29 = arith.mulf %2, %28 : vector<8x1920xf32>
    %30 = vector.broadcast %27 : vector<8x1xf32> to vector<8x1920xf32>
    %31 = arith.addf %29, %30 : vector<8x1920xf32>
    %cst_13 = arith.constant 0.000000e+00 : f32
    %32 = vector.broadcast %cst_13 : f32 to vector<8x1920xf32>
    %33 = arith.maximumf %31, %32 : vector<8x1920xf32>
    %34 = vector.extract_strided_slice %33 {offsets = [0, 0], sizes = [8, 384], strides = [1, 1]} : vector<8x1920xf32> to vector<8x384xf32>
    %35 = vector.extract_strided_slice %33 {offsets = [0, 384], sizes = [8, 384], strides = [1, 1]} : vector<8x1920xf32> to vector<8x384xf32>
    %36 = arith.maximumf %34, %35 : vector<8x384xf32>
    %37 = vector.extract_strided_slice %33 {offsets = [0, 768], sizes = [8, 384], strides = [1, 1]} : vector<8x1920xf32> to vector<8x384xf32>
    %38 = arith.maximumf %36, %37 : vector<8x384xf32>
    %39 = vector.extract_strided_slice %33 {offsets = [0, 1152], sizes = [8, 384], strides = [1, 1]} : vector<8x1920xf32> to vector<8x384xf32>
    %40 = arith.maximumf %38, %39 : vector<8x384xf32>
    %c0_14 = arith.constant 0 : index
    %c0_15 = arith.constant 0 : index
    %41 = vector.load %arg4[%c0_14, %c0_15] : memref<8x384xf32, #tpu.memory_space<vmem>>, vector<8x384xf32>
    tpu.vector_store %arg4[%c0_14, %c0_15], %40 {strides = array<i32>} : memref<8x384xf32, #tpu.memory_space<vmem>>, vector<8x384xf32>,
    return
  }
  func.func @transform_0(%arg0: i32) -> (i32, i32) {
    %c0_i32 = arith.constant 0 : i32
    %c0_i32_0 = arith.constant 0 : i32
    %c0_i32_1 = arith.constant 0 : i32
    return %c0_i32, %c0_i32_0 : i32, i32
  }
  func.func @transform_1(%arg0: i32) -> (i32, i32) {
    %c0_i32 = arith.constant 0 : i32
    %c0_i32_0 = arith.constant 0 : i32
    %c0_i32_1 = arith.constant 0 : i32
    return %c0_i32, %c0_i32_0 : i32, i32
  }
  func.func @transform_2(%arg0: i32) -> (i32, i32) {
    %c0_i32 = arith.constant 0 : i32
    %c0_i32_0 = arith.constant 0 : i32
    %c0_i32_1 = arith.constant 0 : i32
    return %c0_i32, %c0_i32_0 : i32, i32
  }
  func.func @transform_3(%arg0: i32) -> (i32, i32) {
    %c0_i32 = arith.constant 0 : i32
    %c0_i32_0 = arith.constant 0 : i32
    %c0_i32_1 = arith.constant 0 : i32
    return %c0_i32, %c0_i32_0 : i32, i32
  }
}

module attributes {stable_mosaic.version = 11 : i64} {
  func.func @_conv_bn_relu_pool_kernel(%arg0: i32, %arg1: memref<16x64xbf16, #tpu.memory_space<vmem>>, %arg2: memref<64x384xbf16, #tpu.memory_space<vmem>>, %arg3: memref<16x2xf32, #tpu.memory_space<vmem>>, %arg4: memref<16x128xf32, #tpu.memory_space<vmem>>) attributes {dimension_semantics = [#tpu.dimension_semantics<arbitrary>], iteration_bounds = array<i64: 1>, scalar_prefetch = 0 : i64, scratch_operands = 0 : i64, tpu.core_type = #tpu.core_type<tc>, window_params = [{pipeline_mode = #tpu.pipeline_mode<synchronous>, transform_indices = @transform_0, window_bounds = array<i64: 16, 64>}, {pipeline_mode = #tpu.pipeline_mode<synchronous>, transform_indices = @transform_1, window_bounds = array<i64: 64, 384>}, {pipeline_mode = #tpu.pipeline_mode<synchronous>, transform_indices = @transform_2, window_bounds = array<i64: 16, 2>}, {pipeline_mode = #tpu.pipeline_mode<synchronous>, transform_indices = @transform_3, window_bounds = array<i64: 16, 128>}]} {
    %c0 = arith.constant 0 : index
    %c0_0 = arith.constant 0 : index
    %0 = vector.load %arg1[%c0, %c0_0] : memref<16x64xbf16, #tpu.memory_space<vmem>>, vector<16x64xbf16>
    %c0_1 = arith.constant 0 : index
    %c0_2 = arith.constant 0 : index
    %1 = vector.load %arg2[%c0_1, %c0_2] : memref<64x384xbf16, #tpu.memory_space<vmem>>, vector<64x384xbf16>
    %cst = arith.constant dense<0.000000e+00> : vector<16x384xf32>
    %2 = tpu.matmul %0, %1, %cst {dimension_numbers = #tpu.dot_dimension_numbers<[1], [0], [0], [1], [0, 0, 1, 1], [], []>} : vector<16x64xbf16>, vector<64x384xbf16>, vector<16x384xf32> -> vector<16x384xf32>
    %cst_3 = arith.constant dense<0.000000e+00> : vector<16xf32>
    %3 = vector.multi_reduction <add>, %2, %cst_3 [1] : vector<16x384xf32> to vector<16xf32>
    %4 = vector.shape_cast %3 : vector<16xf32> to vector<16x1xf32>
    %cst_4 = arith.constant 0.00892857183 : f32
    %5 = vector.broadcast %cst_4 : f32 to vector<16x1xf32>
    %6 = arith.mulf %4, %5 : vector<16x1xf32>
    %7 = vector.broadcast %6 : vector<16x1xf32> to vector<16x384xf32>
    %8 = arith.subf %2, %7 : vector<16x384xf32>
    %9 = arith.mulf %8, %8 : vector<16x384xf32>
    %cst_5 = arith.constant dense<0.000000e+00> : vector<16xf32>
    %10 = vector.multi_reduction <add>, %9, %cst_5 [1] : vector<16x384xf32> to vector<16xf32>
    %11 = vector.shape_cast %10 : vector<16xf32> to vector<16x1xf32>
    %12 = arith.mulf %6, %6 : vector<16x1xf32>
    %cst_6 = arith.constant 2.720000e+02 : f32
    %13 = vector.broadcast %cst_6 : f32 to vector<16x1xf32>
    %14 = arith.mulf %13, %12 : vector<16x1xf32>
    %15 = arith.subf %11, %14 : vector<16x1xf32>
    %cst_7 = arith.constant 0.00892857183 : f32
    %16 = vector.broadcast %cst_7 : f32 to vector<16x1xf32>
    %17 = arith.mulf %15, %16 : vector<16x1xf32>
    %cst_8 = arith.constant 0.000000e+00 : f32
    %18 = vector.broadcast %cst_8 : f32 to vector<16x1xf32>
    %19 = arith.maximumf %17, %18 : vector<16x1xf32>
    %c0_9 = arith.constant 0 : index
    %c0_10 = arith.constant 0 : index
    %20 = vector.load %arg3[%c0_9, %c0_10] : memref<16x2xf32, #tpu.memory_space<vmem>>, vector<16x1xf32>
    %c0_11 = arith.constant 0 : index
    %c1 = arith.constant 1 : index
    %21 = vector.load %arg3[%c0_11, %c1] : memref<16x2xf32, #tpu.memory_space<vmem>>, vector<16x1xf32>
    %cst_12 = arith.constant 9.99999974E-6 : f32
    %22 = vector.broadcast %cst_12 : f32 to vector<16x1xf32>
    %23 = arith.addf %19, %22 : vector<16x1xf32>
    %24 = math.rsqrt %23 : vector<16x1xf32>
    %25 = arith.mulf %20, %24 : vector<16x1xf32>
    %26 = arith.mulf %6, %25 : vector<16x1xf32>
    %27 = arith.subf %21, %26 : vector<16x1xf32>
    %28 = vector.broadcast %25 : vector<16x1xf32> to vector<16x384xf32>
    %29 = arith.mulf %2, %28 : vector<16x384xf32>
    %30 = vector.broadcast %27 : vector<16x1xf32> to vector<16x384xf32>
    %31 = arith.addf %29, %30 : vector<16x384xf32>
    %cst_13 = arith.constant 0.000000e+00 : f32
    %32 = vector.broadcast %cst_13 : f32 to vector<16x384xf32>
    %33 = arith.maximumf %31, %32 : vector<16x384xf32>
    %34 = vector.extract_strided_slice %33 {offsets = [0, 0], sizes = [16, 128], strides = [1, 1]} : vector<16x384xf32> to vector<16x128xf32>
    %35 = vector.extract_strided_slice %33 {offsets = [0, 128], sizes = [16, 128], strides = [1, 1]} : vector<16x384xf32> to vector<16x128xf32>
    %36 = arith.maximumf %34, %35 : vector<16x128xf32>
    %c0_14 = arith.constant 0 : index
    %c0_15 = arith.constant 0 : index
    %37 = vector.load %arg4[%c0_14, %c0_15] : memref<16x128xf32, #tpu.memory_space<vmem>>, vector<16x128xf32>
    tpu.vector_store %arg4[%c0_14, %c0_15], %36 {strides = array<i32>} : memref<16x128xf32, #tpu.memory_space<vmem>>, vector<16x128xf32>,
    return
  }
  func.func @transform_0(%arg0: i32) -> (i32, i32) {
    %c0_i32 = arith.constant 0 : i32
    %c0_i32_0 = arith.constant 0 : i32
    %c0_i32_1 = arith.constant 0 : i32
    return %c0_i32, %c0_i32_0 : i32, i32
  }
  func.func @transform_1(%arg0: i32) -> (i32, i32) {
    %c0_i32 = arith.constant 0 : i32
    %c0_i32_0 = arith.constant 0 : i32
    %c0_i32_1 = arith.constant 0 : i32
    return %c0_i32, %c0_i32_0 : i32, i32
  }
  func.func @transform_2(%arg0: i32) -> (i32, i32) {
    %c0_i32 = arith.constant 0 : i32
    %c0_i32_0 = arith.constant 0 : i32
    %c0_i32_1 = arith.constant 0 : i32
    return %c0_i32, %c0_i32_0 : i32, i32
  }
  func.func @transform_3(%arg0: i32) -> (i32, i32) {
    %c0_i32 = arith.constant 0 : i32
    %c0_i32_0 = arith.constant 0 : i32
    %c0_i32_1 = arith.constant 0 : i32
    return %c0_i32, %c0_i32_0 : i32, i32
  }
}

module attributes {stable_mosaic.version = 11 : i64} {
  func.func @_fc_stack_kernel(%arg0: i32, %arg1: memref<2x128xbf16, #tpu.memory_space<vmem>>, %arg2: memref<128x32xbf16, #tpu.memory_space<vmem>>, %arg3: memref<3x32x32xbf16, #tpu.memory_space<vmem>>, %arg4: memref<4x32xf32, #tpu.memory_space<vmem>>, %arg5: memref<2x32xf32, #tpu.memory_space<vmem>>) attributes {dimension_semantics = [#tpu.dimension_semantics<arbitrary>], iteration_bounds = array<i64: 1>, scalar_prefetch = 0 : i64, scratch_operands = 0 : i64, tpu.core_type = #tpu.core_type<tc>, window_params = [{pipeline_mode = #tpu.pipeline_mode<synchronous>, transform_indices = @transform_0, window_bounds = array<i64: 2, 128>}, {pipeline_mode = #tpu.pipeline_mode<synchronous>, transform_indices = @transform_1, window_bounds = array<i64: 128, 32>}, {pipeline_mode = #tpu.pipeline_mode<synchronous>, transform_indices = @transform_2, window_bounds = array<i64: 3, 32, 32>}, {pipeline_mode = #tpu.pipeline_mode<synchronous>, transform_indices = @transform_3, window_bounds = array<i64: 4, 32>}, {pipeline_mode = #tpu.pipeline_mode<synchronous>, transform_indices = @transform_4, window_bounds = array<i64: 2, 32>}]} {
    %c0 = arith.constant 0 : index
    %c0_0 = arith.constant 0 : index
    %0 = vector.load %arg1[%c0, %c0_0] : memref<2x128xbf16, #tpu.memory_space<vmem>>, vector<2x128xbf16>
    %c0_1 = arith.constant 0 : index
    %c0_2 = arith.constant 0 : index
    %1 = vector.load %arg2[%c0_1, %c0_2] : memref<128x32xbf16, #tpu.memory_space<vmem>>, vector<128x32xbf16>
    %cst = arith.constant dense<0.000000e+00> : vector<2x32xf32>
    %2 = tpu.matmul %0, %1, %cst {dimension_numbers = #tpu.dot_dimension_numbers<[1], [0], [0], [1], [0, 0, 1, 1], [], []>} : vector<2x128xbf16>, vector<128x32xbf16>, vector<2x32xf32> -> vector<2x32xf32>
    %c0_3 = arith.constant 0 : index
    %c0_4 = arith.constant 0 : index
    %3 = vector.load %arg4[%c0_3, %c0_4] : memref<4x32xf32, #tpu.memory_space<vmem>>, vector<1x32xf32>
    %4 = vector.broadcast %3 : vector<1x32xf32> to vector<2x32xf32>
    %5 = arith.addf %2, %4 : vector<2x32xf32>
    %cst_5 = arith.constant 0.000000e+00 : f32
    %6 = vector.broadcast %cst_5 : f32 to vector<2x32xf32>
    %7 = arith.maximumf %5, %6 : vector<2x32xf32>
    %8 = arith.truncf %7 : vector<2x32xf32> to vector<2x32xbf16>
    %c0_6 = arith.constant 0 : index
    %c0_7 = arith.constant 0 : index
    %c0_8 = arith.constant 0 : index
    %9 = vector.load %arg3[%c0_6, %c0_7, %c0_8] : memref<3x32x32xbf16, #tpu.memory_space<vmem>>, vector<1x32x32xbf16>
    %10 = vector.shape_cast %9 : vector<1x32x32xbf16> to vector<32x32xbf16>
    %cst_9 = arith.constant dense<0.000000e+00> : vector<2x32xf32>
    %11 = tpu.matmul %8, %10, %cst_9 {dimension_numbers = #tpu.dot_dimension_numbers<[1], [0], [0], [1], [0, 0, 1, 1], [], []>} : vector<2x32xbf16>, vector<32x32xbf16>, vector<2x32xf32> -> vector<2x32xf32>
    %c1 = arith.constant 1 : index
    %c0_10 = arith.constant 0 : index
    %12 = vector.load %arg4[%c1, %c0_10] : memref<4x32xf32, #tpu.memory_space<vmem>>, vector<1x32xf32>
    %13 = vector.broadcast %12 : vector<1x32xf32> to vector<2x32xf32>
    %14 = arith.addf %11, %13 : vector<2x32xf32>
    %cst_11 = arith.constant 0.000000e+00 : f32
    %15 = vector.broadcast %cst_11 : f32 to vector<2x32xf32>
    %16 = arith.maximumf %14, %15 : vector<2x32xf32>
    %17 = arith.truncf %16 : vector<2x32xf32> to vector<2x32xbf16>
    %c1_12 = arith.constant 1 : index
    %c0_13 = arith.constant 0 : index
    %c0_14 = arith.constant 0 : index
    %18 = vector.load %arg3[%c1_12, %c0_13, %c0_14] : memref<3x32x32xbf16, #tpu.memory_space<vmem>>, vector<1x32x32xbf16>
    %19 = vector.shape_cast %18 : vector<1x32x32xbf16> to vector<32x32xbf16>
    %cst_15 = arith.constant dense<0.000000e+00> : vector<2x32xf32>
    %20 = tpu.matmul %17, %19, %cst_15 {dimension_numbers = #tpu.dot_dimension_numbers<[1], [0], [0], [1], [0, 0, 1, 1], [], []>} : vector<2x32xbf16>, vector<32x32xbf16>, vector<2x32xf32> -> vector<2x32xf32>
    %c2 = arith.constant 2 : index
    %c0_16 = arith.constant 0 : index
    %21 = vector.load %arg4[%c2, %c0_16] : memref<4x32xf32, #tpu.memory_space<vmem>>, vector<1x32xf32>
    %22 = vector.broadcast %21 : vector<1x32xf32> to vector<2x32xf32>
    %23 = arith.addf %20, %22 : vector<2x32xf32>
    %cst_17 = arith.constant 0.000000e+00 : f32
    %24 = vector.broadcast %cst_17 : f32 to vector<2x32xf32>
    %25 = arith.maximumf %23, %24 : vector<2x32xf32>
    %26 = arith.truncf %25 : vector<2x32xf32> to vector<2x32xbf16>
    %c2_18 = arith.constant 2 : index
    %c0_19 = arith.constant 0 : index
    %c0_20 = arith.constant 0 : index
    %27 = vector.load %arg3[%c2_18, %c0_19, %c0_20] : memref<3x32x32xbf16, #tpu.memory_space<vmem>>, vector<1x32x32xbf16>
    %28 = vector.shape_cast %27 : vector<1x32x32xbf16> to vector<32x32xbf16>
    %cst_21 = arith.constant dense<0.000000e+00> : vector<2x32xf32>
    %29 = tpu.matmul %26, %28, %cst_21 {dimension_numbers = #tpu.dot_dimension_numbers<[1], [0], [0], [1], [0, 0, 1, 1], [], []>} : vector<2x32xbf16>, vector<32x32xbf16>, vector<2x32xf32> -> vector<2x32xf32>
    %c3 = arith.constant 3 : index
    %c0_22 = arith.constant 0 : index
    %30 = vector.load %arg4[%c3, %c0_22] : memref<4x32xf32, #tpu.memory_space<vmem>>, vector<1x32xf32>
    %31 = vector.broadcast %30 : vector<1x32xf32> to vector<2x32xf32>
    %32 = arith.addf %29, %31 : vector<2x32xf32>
    %c0_23 = arith.constant 0 : index
    %c0_24 = arith.constant 0 : index
    %33 = vector.load %arg5[%c0_23, %c0_24] : memref<2x32xf32, #tpu.memory_space<vmem>>, vector<2x32xf32>
    tpu.vector_store %arg5[%c0_23, %c0_24], %32 {strides = array<i32>} : memref<2x32xf32, #tpu.memory_space<vmem>>, vector<2x32xf32>,
    return
  }
  func.func @transform_0(%arg0: i32) -> (i32, i32) {
    %c0_i32 = arith.constant 0 : i32
    %c0_i32_0 = arith.constant 0 : i32
    %c0_i32_1 = arith.constant 0 : i32
    return %c0_i32, %c0_i32_0 : i32, i32
  }
  func.func @transform_1(%arg0: i32) -> (i32, i32) {
    %c0_i32 = arith.constant 0 : i32
    %c0_i32_0 = arith.constant 0 : i32
    %c0_i32_1 = arith.constant 0 : i32
    return %c0_i32, %c0_i32_0 : i32, i32
  }
  func.func @transform_2(%arg0: i32) -> (i32, i32, i32) {
    %c0_i32 = arith.constant 0 : i32
    %c0_i32_0 = arith.constant 0 : i32
    %c0_i32_1 = arith.constant 0 : i32
    %c0_i32_2 = arith.constant 0 : i32
    return %c0_i32, %c0_i32_0, %c0_i32_1 : i32, i32, i32
  }
  func.func @transform_3(%arg0: i32) -> (i32, i32) {
    %c0_i32 = arith.constant 0 : i32
    %c0_i32_0 = arith.constant 0 : i32
    %c0_i32_1 = arith.constant 0 : i32
    return %c0_i32, %c0_i32_0 : i32, i32
  }
  func.func @transform_4(%arg0: i32) -> (i32, i32) {
    %c0_i32 = arith.constant 0 : i32
    %c0_i32_0 = arith.constant 0 : i32
    %c0_i32_1 = arith.constant 0 : i32
    return %c0_i32, %c0_i32_0 : i32, i32
  }
}

module attributes {stable_mosaic.version = 11 : i64} {
  func.func @_conv_bn_relu_pool_kernel(%arg0: i32, %arg1: memref<16x128xbf16, #tpu.memory_space<vmem>>, %arg2: memref<128x256xbf16, #tpu.memory_space<vmem>>, %arg3: memref<16x2xf32, #tpu.memory_space<vmem>>, %arg4: memref<16x128xf32, #tpu.memory_space<vmem>>) attributes {dimension_semantics = [#tpu.dimension_semantics<arbitrary>], iteration_bounds = array<i64: 1>, scalar_prefetch = 0 : i64, scratch_operands = 0 : i64, tpu.core_type = #tpu.core_type<tc>, window_params = [{pipeline_mode = #tpu.pipeline_mode<synchronous>, transform_indices = @transform_0, window_bounds = array<i64: 16, 128>}, {pipeline_mode = #tpu.pipeline_mode<synchronous>, transform_indices = @transform_1, window_bounds = array<i64: 128, 256>}, {pipeline_mode = #tpu.pipeline_mode<synchronous>, transform_indices = @transform_2, window_bounds = array<i64: 16, 2>}, {pipeline_mode = #tpu.pipeline_mode<synchronous>, transform_indices = @transform_3, window_bounds = array<i64: 16, 128>}]} {
    %c0 = arith.constant 0 : index
    %c0_0 = arith.constant 0 : index
    %0 = vector.load %arg1[%c0, %c0_0] : memref<16x128xbf16, #tpu.memory_space<vmem>>, vector<16x128xbf16>
    %c0_1 = arith.constant 0 : index
    %c0_2 = arith.constant 0 : index
    %1 = vector.load %arg2[%c0_1, %c0_2] : memref<128x256xbf16, #tpu.memory_space<vmem>>, vector<128x256xbf16>
    %cst = arith.constant dense<0.000000e+00> : vector<16x256xf32>
    %2 = tpu.matmul %0, %1, %cst {dimension_numbers = #tpu.dot_dimension_numbers<[1], [0], [0], [1], [0, 0, 1, 1], [], []>} : vector<16x128xbf16>, vector<128x256xbf16>, vector<16x256xf32> -> vector<16x256xf32>
    %cst_3 = arith.constant dense<0.000000e+00> : vector<16xf32>
    %3 = vector.multi_reduction <add>, %2, %cst_3 [1] : vector<16x256xf32> to vector<16xf32>
    %4 = vector.shape_cast %3 : vector<16xf32> to vector<16x1xf32>
    %cst_4 = arith.constant 1.250000e-01 : f32
    %5 = vector.broadcast %cst_4 : f32 to vector<16x1xf32>
    %6 = arith.mulf %4, %5 : vector<16x1xf32>
    %7 = vector.broadcast %6 : vector<16x1xf32> to vector<16x256xf32>
    %8 = arith.subf %2, %7 : vector<16x256xf32>
    %9 = arith.mulf %8, %8 : vector<16x256xf32>
    %cst_5 = arith.constant dense<0.000000e+00> : vector<16xf32>
    %10 = vector.multi_reduction <add>, %9, %cst_5 [1] : vector<16x256xf32> to vector<16xf32>
    %11 = vector.shape_cast %10 : vector<16xf32> to vector<16x1xf32>
    %12 = arith.mulf %6, %6 : vector<16x1xf32>
    %cst_6 = arith.constant 2.480000e+02 : f32
    %13 = vector.broadcast %cst_6 : f32 to vector<16x1xf32>
    %14 = arith.mulf %13, %12 : vector<16x1xf32>
    %15 = arith.subf %11, %14 : vector<16x1xf32>
    %cst_7 = arith.constant 1.250000e-01 : f32
    %16 = vector.broadcast %cst_7 : f32 to vector<16x1xf32>
    %17 = arith.mulf %15, %16 : vector<16x1xf32>
    %cst_8 = arith.constant 0.000000e+00 : f32
    %18 = vector.broadcast %cst_8 : f32 to vector<16x1xf32>
    %19 = arith.maximumf %17, %18 : vector<16x1xf32>
    %c0_9 = arith.constant 0 : index
    %c0_10 = arith.constant 0 : index
    %20 = vector.load %arg3[%c0_9, %c0_10] : memref<16x2xf32, #tpu.memory_space<vmem>>, vector<16x1xf32>
    %c0_11 = arith.constant 0 : index
    %c1 = arith.constant 1 : index
    %21 = vector.load %arg3[%c0_11, %c1] : memref<16x2xf32, #tpu.memory_space<vmem>>, vector<16x1xf32>
    %cst_12 = arith.constant 9.99999974E-6 : f32
    %22 = vector.broadcast %cst_12 : f32 to vector<16x1xf32>
    %23 = arith.addf %19, %22 : vector<16x1xf32>
    %24 = math.rsqrt %23 : vector<16x1xf32>
    %25 = arith.mulf %20, %24 : vector<16x1xf32>
    %26 = arith.mulf %6, %25 : vector<16x1xf32>
    %27 = arith.subf %21, %26 : vector<16x1xf32>
    %28 = vector.broadcast %25 : vector<16x1xf32> to vector<16x256xf32>
    %29 = arith.mulf %2, %28 : vector<16x256xf32>
    %30 = vector.broadcast %27 : vector<16x1xf32> to vector<16x256xf32>
    %31 = arith.addf %29, %30 : vector<16x256xf32>
    %cst_13 = arith.constant 0.000000e+00 : f32
    %32 = vector.broadcast %cst_13 : f32 to vector<16x256xf32>
    %33 = arith.maximumf %31, %32 : vector<16x256xf32>
    %34 = vector.extract_strided_slice %33 {offsets = [0, 0], sizes = [16, 128], strides = [1, 1]} : vector<16x256xf32> to vector<16x128xf32>
    %35 = vector.extract_strided_slice %33 {offsets = [0, 128], sizes = [16, 128], strides = [1, 1]} : vector<16x256xf32> to vector<16x128xf32>
    %36 = arith.maximumf %34, %35 : vector<16x128xf32>
    %c0_14 = arith.constant 0 : index
    %c0_15 = arith.constant 0 : index
    %37 = vector.load %arg4[%c0_14, %c0_15] : memref<16x128xf32, #tpu.memory_space<vmem>>, vector<16x128xf32>
    tpu.vector_store %arg4[%c0_14, %c0_15], %36 {strides = array<i32>} : memref<16x128xf32, #tpu.memory_space<vmem>>, vector<16x128xf32>,
    return
  }
  func.func @transform_0(%arg0: i32) -> (i32, i32) {
    %c0_i32 = arith.constant 0 : i32
    %c0_i32_0 = arith.constant 0 : i32
    %c0_i32_1 = arith.constant 0 : i32
    return %c0_i32, %c0_i32_0 : i32, i32
  }
  func.func @transform_1(%arg0: i32) -> (i32, i32) {
    %c0_i32 = arith.constant 0 : i32
    %c0_i32_0 = arith.constant 0 : i32
    %c0_i32_1 = arith.constant 0 : i32
    return %c0_i32, %c0_i32_0 : i32, i32
  }
  func.func @transform_2(%arg0: i32) -> (i32, i32) {
    %c0_i32 = arith.constant 0 : i32
    %c0_i32_0 = arith.constant 0 : i32
    %c0_i32_1 = arith.constant 0 : i32
    return %c0_i32, %c0_i32_0 : i32, i32
  }
  func.func @transform_3(%arg0: i32) -> (i32, i32) {
    %c0_i32 = arith.constant 0 : i32
    %c0_i32_0 = arith.constant 0 : i32
    %c0_i32_1 = arith.constant 0 : i32
    return %c0_i32, %c0_i32_0 : i32, i32
  }
}

</mosaic_0001>

<bundles_post_ra>
// kernel: _lambda_.4
= control target key start
LH: loop header
LB: loop body
LE: loop exit
PB: predicated region body
PF: predicated region fallthrough
CT: control target
= control target key end

     0   :  { %v905_v1 = vmov 0   ;;  %vm292_vm0 = vcmask 392192   ;;  %v906_v42 = vmov 0.0   ;;  %vm907_vm1 = vmmov 0   ;;  %s909_s21 = smov 1   ;;  %s1166_s1 = inlined_call_operand.vmem [shape: bf16[48,1920], index: 1, kind: input, shape index: {}]   ;;  %s1167_s0 = inlined_call_operand.vmem [shape: bf16[8,48], index: 0, kind: input, shape index: {}]   ;;  %s1168_s2 = inlined_call_operand.vmem [shape: f32[8,2], index: 2, kind: input, shape index: {}]   ;;  %s1169_s3 = inlined_call_operand.vmem [shape: f32[8,384], index: 3, kind: output, shape index: {}]  }
   0x1   :  { %v837_v0 = vld [vmem:[%s1166_s1 + $0x4] ss:$60 sps:$4 sm:$0xff]   ;;  %328 = vmatprep.mubr.bf16.mxu0 %v905_v1  ;;  %369 = vmatprep.mubr.bf16.mxu1 %v905_v1  ;;  %v840_v3 = vld [vmem:[%s1166_s1 + $0xc] ss:$60 sps:$4 sm:$0xff]   ;;  %v843_v5 = vld [vmem:[%s1166_s1 + $0x7c] ss:$60 sps:$4 sm:$0xff]  }
   0x2   :  { %v839_v2 = vld [vmem:[%s1166_s1] ss:$60 sps:$4 sm:$0xff]   ;;  %835 = vset.pattern.permute.xlu1 %v905_v1  ;;  %296 = vmatprep.subr.bf16.mxu0 %v837_v0  ;;  %v842_v4 = vld [vmem:[%s1166_s1 + $0x8] ss:$60 sps:$4 sm:$0xff]   ;;  %v845_v6 = vld [vmem:[%s1166_s1 + $0x78] ss:$60 sps:$4 sm:$0xff]  }
   0x3   :  { %297 = vmatpush1.bf16.msra.mxu0 %v839_v2  ;;  %337 = vmatprep.subr.bf16.mxu1 %v840_v3  ;;  %v846_v7 = vld [vmem:[%s1166_s1 + $0x84] ss:$60 sps:$4 sm:$0xff]   ;;  %v849_v9 = vld [vmem:[%s1166_s1 + $0xf4] ss:$60 sps:$4 sm:$0xff]   ;;  %v852_v11 = vld [vmem:[%s1166_s1 + $0xfc] ss:$60 sps:$4 sm:$0xff]  }
   0x4   :  { %338 = vmatpush1.bf16.msra.mxu1 %v842_v4  ;;  %298 = vmatprep.subr.bf16.mxu0 %v843_v5  ;;  %v848_v8 = vld [vmem:[%s1166_s1 + $0x80] ss:$60 sps:$4 sm:$0xff]   ;;  %v851_v10 = vld [vmem:[%s1166_s1 + $0xf0] ss:$60 sps:$4 sm:$0xff]   ;;  %v854_v12 = vld [vmem:[%s1166_s1 + $0xf8] ss:$60 sps:$4 sm:$0xff]  }
   0x5   :  { %339 = vmatprep.subr.bf16.mxu1 %v846_v7  ;;  %v857_v13 = vld [vmem:[%s1166_s1 + $0x14] ss:$60 sps:$4 sm:$0xff]   ;;  %v975_v14 = vld [vmem:[%s1167_s0] sm:$0xf]  ;;  %v860_v15 = vld [vmem:[%s1166_s1 + $0x1c] ss:$60 sps:$4 sm:$0xff]  }
   0x6   :  { %v855_v16 = vld [vmem:[%s1166_s1 + $0x10] ss:$60 sps:$4 sm:$0xff]   ;;  %v858_v18 = vld [vmem:[%s1166_s1 + $0x18] ss:$60 sps:$4 sm:$0xff]   ;;  %v861_v20 = vld [vmem:[%s1166_s1 + $0x88] ss:$60 sps:$4 sm:$0xff]  }
   0x7   :  { %299 = vmatpush1.bf16.msra.mxu0 %v845_v6  ;;  %v863_v17 = vld [vmem:[%s1166_s1 + $0x8c] ss:$60 sps:$4 sm:$0xff]   ;;  %v866_v19 = vld [vmem:[%s1166_s1 + $0x94] ss:$60 sps:$4 sm:$0xff]   ;;  %v869_v21 = vld [vmem:[%s1166_s1 + $0x104] ss:$60 sps:$4 sm:$0xff]  }
   0x8   :  { %300 = vmatprep.subr.bf16.mxu0 %v849_v9  ;;  %340 = vmatpush1.bf16.msra.mxu1 %v848_v8  ;;  %v864_v22 = vld [vmem:[%s1166_s1 + $0x90] ss:$60 sps:$4 sm:$0xff]   ;;  %v867_v24 = vld [vmem:[%s1166_s1 + $0x100] ss:$60 sps:$4 sm:$0xff]   ;;  %v870_v26 = vld [vmem:[%s1166_s1 + $0x108] ss:$60 sps:$4 sm:$0xff]  }
   0x9   :  { %341 = vmatprep.subr.bf16.mxu1 %v852_v11  ;;  %v872_v23 = vld [vmem:[%s1166_s1 + $0x10c] ss:$60 sps:$4 sm:$0xff]   ;;  %v875_v25 = vld [vmem:[%s1166_s1 + $0x24] ss:$60 sps:$4 sm:$0xff]   ;;  %v881_v29 = vld [vmem:[%s1166_s1 + $0x9c] ss:$60 sps:$4 sm:$0xff]  }
   0xa   :  { %v878_v27 = vld [vmem:[%s1166_s1 + $0x2c] ss:$60 sps:$4 sm:$0xff]   ;;  %v873_v28 = vld [vmem:[%s1166_s1 + $0x20] ss:$60 sps:$4 sm:$0xff]   ;;  %v879_v32 = vld [vmem:[%s1166_s1 + $0x98] ss:$60 sps:$4 sm:$0xff]  }
   0xb   :  { %301 = vmatpush1.bf16.msra.mxu0 %v851_v10  ;;  %v876_v30 = vld [vmem:[%s1166_s1 + $0x28] ss:$60 sps:$4 sm:$0xff]   ;;  %v887_v33 = vld [vmem:[%s1166_s1 + $0x114] ss:$60 sps:$4 sm:$0xff]   ;;  %v882_v34 = vld [vmem:[%s1166_s1 + $0xa0] ss:$60 sps:$4 sm:$0xff]  }
   0xc   :  { %378 = vmatprep.subr.bf16.mxu0 %v857_v13  ;;  %342 = vmatpush1.bf16.msra.mxu1 %v854_v12  ;;  %v884_v31 = vld [vmem:[%s1166_s1 + $0xa4] ss:$60 sps:$4 sm:$0xff]   ;;  %v890_v35 = vld [vmem:[%s1166_s1 + $0x11c] ss:$60 sps:$4 sm:$0xff]   ;;  %v885_v36 = vld [vmem:[%s1166_s1 + $0x110] ss:$60 sps:$4 sm:$0xff]  }
   0xd   :  { %419 = vmatprep.subr.bf16.mxu1 %v860_v15  ;;  %v893_v37 = vld [vmem:[%s1166_s1 + $0x34] ss:$60 sps:$4 sm:$0xff]   ;;  %v897_v40 = vld [vmem:[%s1166_s1 + $0xac] ss:$60 sps:$4 sm:$0xff]   ;;  %v901_v44 = vld [vmem:[%s1166_s1 + $0x124] ss:$60 sps:$4 sm:$0xff]  }
   0xe   :  { %808 = vmatmul.mubr.msk.bf16.vlgmr.msra.gmra.mrb[0].mxu0 %vm292_vm0, %v975_v14  ;;  %v888_v38 = vld [vmem:[%s1166_s1 + $0x118] ss:$60 sps:$4 sm:$0xff]   ;;  %v891_v39 = vld [vmem:[%s1166_s1 + $0x30] ss:$60 sps:$4 sm:$0xff]   ;;  %v895_v43 = vld [vmem:[%s1166_s1 + $0xa8] ss:$60 sps:$4 sm:$0xff]  }
   0xf   :  { %379 = vmatpush1.bf16.msra.mxu0 %v855_v16  ;;  %410 = vmatprep.mubr.bf16.mxu0 %v905_v1  ;;  %v894_v41 = vld [vmem:[%s1166_s1 + $0x38] ss:$60 sps:$4 sm:$0xff]   ;;  %v898_v45 = vld [vmem:[%s1166_s1 + $0xb0] ss:$60 sps:$4 sm:$0xff]   ;;  %v899_v46 = vld [vmem:[%s1166_s1 + $0x120] ss:$60 sps:$4 sm:$0xff]  }
  0x10   :  { %809 = vmatmul.mubr.msk.bf16.vlgmr.msra.gmra.mrb[0].mxu1 %vm292_vm0, %v975_v14  ;;  %380 = vmatprep.subr.bf16.mxu0 %v863_v17  ;;  %v902_v47 = vld [vmem:[%s1166_s1 + $0x128] ss:$60 sps:$4 sm:$0xff]  }
  0x11   :  { %420 = vmatpush1.bf16.msra.mxu1 %v858_v18  ;;  %451 = vmatprep.mubr.bf16.mxu1 %v905_v1 }
  0x12   :  { %421 = vmatprep.subr.bf16.mxu1 %v866_v19 }
  0x13   :  { %381 = vmatpush1.bf16.msra.mxu0 %v861_v20 }
  0x14   :  { %382 = vmatprep.subr.bf16.mxu0 %v869_v21 }
  0x15   :  { %422 = vmatpush1.bf16.msra.mxu1 %v864_v22 }
  0x16   :  { %423 = vmatprep.subr.bf16.mxu1 %v872_v23 }
  0x17   :  { %383 = vmatpush1.bf16.msra.mxu0 %v867_v24 }
  0x18   :  { %460 = vmatprep.subr.bf16.mxu0 %v875_v25 }
  0x19   :  { %424 = vmatpush1.bf16.msra.mxu1 %v870_v26 }
  0x1a   :  { %810 = vmatmul.mubr.msk.bf16.vlgmr.msra.gmra.mrb[4].mxu0 %vm292_vm0, %v975_v14  ;;  %501 = vmatprep.subr.bf16.mxu1 %v878_v27 }
  0x1b   :  { %461 = vmatpush1.bf16.msra.mxu0 %v873_v28  ;;  %492 = vmatprep.mubr.bf16.mxu0 %v905_v1 }
  0x1c   :  { %811 = vmatmul.mubr.msk.bf16.vlgmr.msra.gmra.mrb[4].mxu1 %vm292_vm0, %v975_v14  ;;  %462 = vmatprep.subr.bf16.mxu0 %v881_v29 }
  0x1d   :  { %502 = vmatpush1.bf16.msra.mxu1 %v876_v30  ;;  %533 = vmatprep.mubr.bf16.mxu1 %v905_v1 }
  0x1e   :  { %503 = vmatprep.subr.bf16.mxu1 %v884_v31 }
  0x1f   :  { %463 = vmatpush1.bf16.msra.mxu0 %v879_v32 }
  0x20   :  { %464 = vmatprep.subr.bf16.mxu0 %v887_v33 }
  0x21   :  { %504 = vmatpush1.bf16.msra.mxu1 %v882_v34 }
  0x22   :  { %505 = vmatprep.subr.bf16.mxu1 %v890_v35 }
  0x23   :  { %465 = vmatpush1.bf16.msra.mxu0 %v885_v36 }
  0x24   :  { %542 = vmatprep.subr.bf16.mxu0 %v893_v37 }
  0x25   :  { %506 = vmatpush1.bf16.msra.mxu1 %v888_v38 }
  0x26   :  { %812 = vmatmul.mubr.msk.bf16.vlgmr.msra.gmra.mrb[8].mxu0 %vm292_vm0, %v975_v14  ;;  %820 = vmatprep.subr.bf16.mxu1 %v906_v42 }
  0x27   :  { %543 = vmatpush1.bf16.msra.mxu0 %v891_v39  ;;  %574 = vmatprep.mubr.bf16.mxu0 %v905_v1 }
  0x28   :  { %813 = vmatmul.mubr.msk.bf16.vlgmr.msra.gmra.mrb[8].mxu1 %vm292_vm0, %v975_v14  ;;  %544 = vmatprep.subr.bf16.mxu0 %v897_v40 }
  0x29   :  { %821 = vmatpush3.bf16.msra.mxu1 %v894_v41  ;;  %826 = vmatprep.mubr.msk.bf16.mxu1 %vm907_vm1, %v906_v42 }
  0x2a   :  { %822 = vmatprep.subr.bf16.mxu1 %v906_v42 }
  0x2b   :  { %545 = vmatpush1.bf16.msra.mxu0 %v895_v43 }
  0x2c   :  { %546 = vmatprep.subr.bf16.mxu0 %v901_v44 }
  0x2d   :  { %823 = vmatpush3.bf16.msra.mxu1 %v898_v45 }
  0x2e   :  { %824 = vmatprep.subr.bf16.mxu1 %v906_v42 }
  0x2f   :  { %547 = vmatpush1.bf16.msra.mxu0 %v899_v46 }
  0x31   :  { %825 = vmatpush3.bf16.msra.mxu1 %v902_v47 }
  0x32   :  { %814 = vmatmul.mubr.msk.bf16.vlgmr.msra.gmra.mrb[12].mxu0 %vm292_vm0, %v975_v14 }
  0x34   :  { %827 = vmatmul.mubr.msk.bf16.vlgmr.msra.gmra.mrb[12].mxu1 %vm292_vm0, %v975_v14 }
  0xe1   :  { %v1094_v48 = vpop.f32.mrb[0].mxu0 }
  0xe2   :  { %v1096_v49 = vpop.f32.mrb[1].mxu0 }
  0xe3   :  { %v623_v50 = vadd.f32 %v1096_v49, %v1094_v48  ;;  %v334_v51 = vpop.f32.mrb[2].mxu0  ;;  %v1100_v52 = vpop.f32.mrb[0].mxu1 }
  0xe4   :  { %v335_v53 = vpop.f32.mrb[3].mxu0  ;;  %v1102_v54 = vpop.f32.mrb[1].mxu1 }
  0xe5   :  { %v624_v55 = vadd.f32 %v623_v50, %v1100_v52  ;;  %v375_v56 = vpop.f32.mrb[2].mxu1 }
  0xe6   :  { %v376_v57 = vpop.f32.mrb[3].mxu1 }
  0xe7   :  { %v625_v58 = vadd.f32 %v624_v55, %v1102_v54 }
  0xed   :  { %v1106_v59 = vpop.f32.mrb[4].mxu0 }
  0xee   :  { %v626_v60 = vadd.f32 %v625_v58, %v1106_v59  ;;  %v1109_v61 = vpop.f32.mrb[5].mxu0 }
  0xef   :  { %v416_v62 = vpop.f32.mrb[6].mxu0  ;;  %v1111_v63 = vpop.f32.mrb[4].mxu1 }
  0xf0   :  { %v627_v0 = vadd.f32 %v626_v60, %v1109_v61  ;;  %v417_v1 = vpop.f32.mrb[7].mxu0  ;;  %v1114_v2 = vpop.f32.mrb[5].mxu1 }
  0xf1   :  { %v457_v3 = vpop.f32.mrb[6].mxu1 }
  0xf2   :  { %v628_v4 = vadd.f32 %v627_v0, %v1111_v63  ;;  %v458_v5 = vpop.f32.mrb[7].mxu1 }
  0xf4   :  { %v629_v6 = vadd.f32 %v628_v4, %v1114_v2 }
  0xf9   :  { %v1118_v7 = vpop.f32.mrb[8].mxu0 }
  0xfa   :  { %v630_v8 = vadd.f32 %v629_v6, %v1118_v7  ;;  %v1121_v9 = vpop.f32.mrb[9].mxu0 }
  0xfb   :  { %v498_v10 = vpop.f32.mrb[10].mxu0  ;;  %v1123_v11 = vpop.f32.mrb[8].mxu1 }
  0xfc   :  { %v631_v12 = vadd.f32 %v630_v8, %v1121_v9  ;;  %v499_v13 = vpop.f32.mrb[11].mxu0  ;;  %v1126_v14 = vpop.f32.mrb[9].mxu1 }
  0xfd   :  { %v539_v15 = vpop.f32.mrb[10].mxu1 }
  0xfe   :  { %v632_v16 = vadd.f32 %v631_v12, %v1123_v11  ;;  %v540_v17 = vpop.f32.mrb[11].mxu1 }
 0x100   :  { %v633_v18 = vadd.f32 %v632_v16, %v1126_v14 }
 0x105   :  { %v576_v19 = vpop.f32.mrb[12].mxu0 }
 0x106   :  { %v634_v20 = vadd.f32 %v633_v18, %v576_v19  ;;  %v578_v21 = vpop.f32.mrb[13].mxu0 }
 0x107   :  { %v617_v22 = vpop.f32.mrb[12].mxu1  ;;  %v580_v23 = vpop.f32.mrb[14].mxu0 }
 0x108   :  { %v635_v24 = vadd.f32 %v634_v20, %v578_v21  ;;  %v828_v25 = vpop.f32.mrb[13].mxu1  ;;  %v581_v26 = vpop.f32.mrb[15].mxu0 }
 0x109   :  { %v620_v27 = vpop.f32.mrb[14].mxu1 }
 0x10a   :  { %v829_v28 = vpop.f32.mrb[15].mxu1  ;;  %v636_v29 = vadd.f32 %v635_v24, %v617_v22 }
 0x10c   :  { %637 = vadd.xlane.f32.xlu0 %v636_v29 }
 0x199   :  { %v638_v30 = vpop.xlane.xlu0 %637 }
 0x19a   :  { %v639_v31 = vmul.f32 0.00057142857, %v638_v30 }
 0x19c   :  { %v640_v32 = vsub.f32 %v1094_v48, %v639_v31  ;;  %v641_v33 = vsub.f32 %v1096_v49, %v639_v31  ;;  %v642_v34 = vsub.f32 %v1100_v52, %v639_v31  ;;  %v643_v37 = vsub.f32 %v1102_v54, %v639_v31 }
 0x19d   :  { %v644_v38 = vsub.f32 %v1106_v59, %v639_v31  ;;  %v645_v41 = vsub.f32 %v1109_v61, %v639_v31  ;;  %v646_v44 = vsub.f32 %v1111_v63, %v639_v31  ;;  %v647_v47 = vsub.f32 %v1114_v2, %v639_v31 }
 0x19e   :  { %v655_v35 = vmul.f32 %v640_v32, %v640_v32  ;;  %v656_v36 = vmul.f32 %v641_v33, %v641_v33  ;;  %v657_v39 = vmul.f32 %v642_v34, %v642_v34  ;;  %v658_v42 = vmul.f32 %v643_v37, %v643_v37 }
 0x19f   :  { %v659_v45 = vmul.f32 %v644_v38, %v644_v38  ;;  %v660_v50 = vmul.f32 %v645_v41, %v645_v41  ;;  %v648_v53 = vsub.f32 %v1118_v7, %v639_v31  ;;  %v661_v55 = vmul.f32 %v646_v44, %v646_v44 }
 0x1a0   :  { %v670_v40 = vadd.f32 %v656_v36, %v655_v35  ;;  %v649_v57 = vsub.f32 %v1121_v9, %v639_v31  ;;  %v662_v58 = vmul.f32 %v647_v47, %v647_v47  ;;  %v650_v62 = vsub.f32 %v1123_v11, %v639_v31 }
 0x1a1   :  { %v663_v0 = vmul.f32 %v648_v53, %v648_v53  ;;  %v651_v3 = vsub.f32 %v1126_v14, %v639_v31  ;;  %v652_v6 = vsub.f32 %v576_v19, %v639_v31  ;;  %v653_v12 = vsub.f32 %v578_v21, %v639_v31 }
 0x1a2   :  { %v671_v43 = vadd.f32 %v670_v40, %v657_v39  ;;  %v664_v4 = vmul.f32 %v649_v57, %v649_v57  ;;  %v665_v8 = vmul.f32 %v650_v62, %v650_v62  ;;  %v654_v16 = vsub.f32 %v617_v22, %v639_v31  ;;  %v691_v22 = vld [vmem:[%s1168_s2] sm:$0xff] }
 0x1a3   :  { %v666_v13 = vmul.f32 %v651_v3, %v651_v3  ;;  %v667_v17 = vmul.f32 %v652_v6, %v652_v6  ;;  %v668_v20 = vmul.f32 %v653_v12, %v653_v12  ;;  %v686_v27 = vmul.f32 %v639_v31, %v639_v31 }
 0x1a4   :  { %v672_v46 = vadd.f32 %v671_v43, %v658_v42  ;;  %v669_v24 = vmul.f32 %v654_v16, %v654_v16  ;;  %v908_v21 = vmov 1  }
 0x1a5   :  { %v687_v28 = vmul.f32 170.0, %v686_v27  ;;  %836 = vset.pattern.permute.xlu0 %v908_v21 }
 0x1a6   :  { %v673_v51 = vadd.f32 %v672_v46, %v659_v45 }
 0x1a8   :  { %v674_v56 = vadd.f32 %v673_v51, %v660_v50 }
 0x1aa   :  { %v675_v60 = vadd.f32 %v674_v56, %v661_v55 }
 0x1ac   :  { %v676_v1 = vadd.f32 %v675_v60, %v662_v58 }
 0x1ae   :  { %v677_v5 = vadd.f32 %v676_v1, %v663_v0 }
 0x1b0   :  { %v678_v10 = vadd.f32 %v677_v5, %v664_v4 }
 0x1b2   :  { %v679_v15 = vadd.f32 %v678_v10, %v665_v8 }
 0x1b4   :  { %v680_v18 = vadd.f32 %v679_v15, %v666_v13 }
 0x1b6   :  { %v681_v23 = vadd.f32 %v680_v18, %v667_v17 }
 0x1b8   :  { %v682_v25 = vadd.f32 %v681_v23, %v668_v20 }
 0x1ba   :  { %v683_v26 = vadd.f32 %v682_v25, %v669_v24 }
 0x1bc   :  { %684 = vadd.xlane.f32.xlu0 %v683_v26 }
 0x249   :  { %v685_v29 = vpop.xlane.xlu0 %684 }
 0x24a   :  { %v688_v30 = vsub.f32 %v685_v29, %v687_v28 }
 0x24c   :  { %v689_v32 = vmul.f32 0.00057142857, %v688_v30 }
 0x24e   :  { %v690_v19 = vmax.f32 %v689_v32, 0.0 }
 0x250   :  { %v692_v33 = vadd.f32 1e-05, %v690_v19 }
 0x252   :  { %903 = vrsqrt.f32 %v692_v33 }
 0x25c   :  { %v904_v34 = vpop.eup %903 }
 0x25d   :  { %v694_v35 = vmul.f32 %v904_v34, %v691_v22 }
 0x25f   :  { %v695_v36 = vmul.f32 %v694_v35, %v639_v31 }
 0x261   :  { %697 = vrot.lane.b32.xlu1 %v695_v36, %s909_s21 }
 0x265   :  { %703 = vperm.xlu1 %835, %v694_v35  }
 0x2d3   :  { %v698_v37 = vpop.permute.xlu1 %697 }
 0x2d4   :  { %v700_v38 = vsub.f32 %v691_v22, %v698_v37 }
 0x2d6   :  { %720 = vperm.xlu0 %836, %v700_v38  }
 0x2e4   :  { %v704_v39 = vpop.permute.xlu1 %703 }
 0x2e5   :  { %v706_v40 = vmul.f32 %v704_v39, %v1094_v48  ;;  %v707_v41 = vmul.f32 %v704_v39, %v1096_v49  ;;  %v708_v42 = vmul.f32 %v704_v39, %v1100_v52  ;;  %v709_v43 = vmul.f32 %v704_v39, %v1102_v54 }
 0x2e6   :  { %v710_v44 = vmul.f32 %v704_v39, %v1106_v59  ;;  %v711_v45 = vmul.f32 %v704_v39, %v1109_v61  ;;  %v712_v31 = vmul.f32 %v704_v39, %v1111_v63  ;;  %v713_v46 = vmul.f32 %v704_v39, %v1114_v2 }
 0x2e7   :  { %v714_v47 = vmul.f32 %v704_v39, %v1118_v7  ;;  %v715_v50 = vmul.f32 %v704_v39, %v1121_v9  ;;  %v716_v48 = vmul.f32 %v704_v39, %v1123_v11  ;;  %v717_v61 = vmul.f32 %v704_v39, %v1126_v14 }
 0x355   :  { %v721_v51 = vpop.permute.xlu0 %720 }
 0x356   :  { %v723_v49 = vadd.f32 %v721_v51, %v706_v40  ;;  %v724_v53 = vadd.f32 %v721_v51, %v707_v41  ;;  %v725_v52 = vadd.f32 %v721_v51, %v708_v42  ;;  %v726_v55 = vadd.f32 %v721_v51, %v709_v43 }
 0x357   :  { %v727_v54 = vadd.f32 %v721_v51, %v710_v44  ;;  %v728_v56 = vadd.f32 %v721_v51, %v711_v45  ;;  %v729_v59 = vadd.f32 %v721_v51, %v712_v31  ;;  %v730_v57 = vadd.f32 %v721_v51, %v713_v46 }
 0x358   :  { %v731_v63 = vadd.f32 %v721_v51, %v714_v47  ;;  %v732_v58 = vadd.f32 %v721_v51, %v715_v50  ;;  %v733_v2 = vadd.f32 %v721_v51, %v716_v48  ;;  %v735_v60 = vmax.f32 %v723_v49, 0.0 }
 0x359   :  { %v736_v7 = vmax.f32 %v724_v53, 0.0  ;;  %v737_v62 = vmax.f32 %v725_v52, 0.0  ;;  %v738_v9 = vmax.f32 %v726_v55, 0.0  ;;  %v734_v0 = vadd.f32 %v721_v51, %v717_v61 }
 0x35a   :  { %v739_v11 = vmax.f32 %v727_v54, 0.0  ;;  %v740_v1 = vmax.f32 %v728_v56, 0.0  ;;  %v741_v3 = vmax.f32 %v729_v59, 0.0  ;;  %v742_v4 = vmax.f32 %v730_v57, 0.0 }
 0x35b   :  { %v743_v5 = vmax.f32 %v731_v63, 0.0  ;;  %v747_v6 = vmax.f32 %v735_v60, %v738_v9  ;;  %v744_v12 = vmax.f32 %v732_v58, 0.0  ;;  %v745_v13 = vmax.f32 %v733_v2, 0.0 }
 0x35c   :  { %v748_v8 = vmax.f32 %v736_v7, %v739_v11  ;;  %v749_v10 = vmax.f32 %v737_v62, %v740_v1  ;;  %v746_v15 = vmax.f32 %v734_v0, 0.0 }
 0x35d   :  { %v750_v14 = vmax.f32 %v747_v6, %v741_v3 }
 0x35e   :  { %v751_v16 = vmax.f32 %v748_v8, %v742_v4  ;;  %v752_v17 = vmax.f32 %v749_v10, %v743_v5 }
 0x35f   :  { %v753_v18 = vmax.f32 %v750_v14, %v744_v12 }
 0x360   :  { %v754_v20 = vmax.f32 %v751_v16, %v745_v13  ;;  %v755_v23 = vmax.f32 %v752_v17, %v746_v15 }
 0x361   :  { %756 = vst [vmem:[%s1169_s3] sm:$0xff] %v753_v18 }
 0x362   :  { %757 = vst [vmem:[%s1169_s3 + $0x8] sm:$0xff] %v754_v20  ;;  %758 = vst [vmem:[%s1169_s3 + $0x10] sm:$0xff] %v755_v23 }

// kernel: _lambda_.5
= control target key start
LH: loop header
LB: loop body
LE: loop exit
PB: predicated region body
PF: predicated region fallthrough
CT: control target
= control target key end

     0   :  { %v351_v1 = vmov 0.0   ;;  %v352_v2 = vmov 0   ;;  %vm353_vm0 = vmmov 0   ;;  %vm102_vm1 = vcmask 523264   ;;  %s355_s13 = smov 1   ;;  %s447_s1 = inlined_call_operand.vmem [shape: bf16[64,384], index: 1, kind: input, shape index: {}]   ;;  %s448_s0 = inlined_call_operand.vmem [shape: bf16[16,64], index: 0, kind: input, shape index: {}]   ;;  %s449_s2 = inlined_call_operand.vmem [shape: f32[16,2], index: 2, kind: input, shape index: {}]   ;;  %s450_s3 = inlined_call_operand.vmem [shape: f32[16,128], index: 3, kind: output, shape index: {}]  }
   0x1   :  { %v330_v0 = vld [vmem:[%s447_s1 + $0x4] ss:$12 sps:$4 sm:$0xff]   ;;  %310 = vmatprep.subr.bf16.mxu1 %v351_v1  ;;  %138 = vmatprep.mubr.bf16.mxu0 %v352_v2  ;;  %v332_v3 = vld [vmem:[%s447_s1] ss:$12 sps:$4 sm:$0xff]   ;;  %v333_v4 = vld [vmem:[%s447_s1 + $0x8] ss:$12 sps:$4 sm:$0xff]  }
   0x2   :  { %318 = vmatprep.mubr.msk.bf16.mxu1 %vm353_vm0, %v351_v1  ;;  %327 = vset.pattern.permute.xlu1 %v352_v2  ;;  %v334_v5 = vld [vmem:[%s447_s1 + $0x1c] ss:$12 sps:$4 sm:$0xff]   ;;  %v336_v6 = vld [vmem:[%s447_s1 + $0x18] ss:$12 sps:$4 sm:$0xff]   ;;  %v337_v7 = vld [vmem:[%s447_s1 + $0x20] ss:$12 sps:$4 sm:$0xff]  }
   0x3   :  { %106 = vmatprep.subr.bf16.mxu0 %v330_v0  ;;  %311 = vmatpush3.bf16.msra.mxu1 %v333_v4  ;;  %v338_v8 = vld [vmem:[%s447_s1 + $0x34] ss:$12 sps:$4 sm:$0xff]   ;;  %v340_v9 = vld [vmem:[%s447_s1 + $0x30] ss:$12 sps:$4 sm:$0xff]   ;;  %v341_v10 = vld [vmem:[%s447_s1 + $0x38] ss:$12 sps:$4 sm:$0xff]  }
   0x4   :  { %107 = vmatpush1.bf16.msra.mxu0 %v332_v3  ;;  %312 = vmatprep.subr.bf16.mxu1 %v351_v1  ;;  %v342_v11 = vld [vmem:[%s447_s1 + $0x4c] ss:$12 sps:$4 sm:$0xff]   ;;  %v344_v12 = vld [vmem:[%s447_s1 + $0x48] ss:$12 sps:$4 sm:$0xff]   ;;  %v345_v13 = vld [vmem:[%s447_s1 + $0x50] ss:$12 sps:$4 sm:$0xff]  }
   0x5   :  { %108 = vmatprep.subr.bf16.mxu0 %v334_v5  ;;  %v346_v14 = vld [vmem:[%s448_s0] sm:$0xff]   ;;  %v354_v61 = vmov 1  }
   0x6   :  { %328 = vset.pattern.permute.xlu0 %v354_v61  ;;  %v230_v62 = vld [vmem:[%s449_s2] sm:$0xff] }
   0x7   :  { %313 = vmatpush3.bf16.msra.mxu1 %v337_v7 }
   0x8   :  { %109 = vmatpush1.bf16.msra.mxu0 %v336_v6  ;;  %314 = vmatprep.subr.bf16.mxu1 %v351_v1 }
   0x9   :  { %110 = vmatprep.subr.bf16.mxu0 %v338_v8 }
   0xb   :  { %315 = vmatpush3.bf16.msra.mxu1 %v341_v10 }
   0xc   :  { %111 = vmatpush1.bf16.msra.mxu0 %v340_v9  ;;  %316 = vmatprep.subr.bf16.mxu1 %v351_v1  ;;  %v231_v1 = vld [vmem:[%s449_s2 + $0x8] sm:$0xff] }
   0xd   :  { %112 = vmatprep.subr.bf16.mxu0 %v342_v11 }
   0xf   :  { %317 = vmatpush3.bf16.msra.mxu1 %v345_v13 }
  0x10   :  { %113 = vmatpush1.bf16.msra.mxu0 %v344_v12 }
  0x12   :  { %319 = vmatmul.mubr.msk.bf16.vlgmr.msra.gmra.mrb[0].mxu1 %vm102_vm1, %v346_v14 }
  0x13   :  { %303 = vmatmul.mubr.msk.bf16.vlgmr.msra.gmra.mrb[0].mxu0 %vm102_vm1, %v346_v14 }
  0xe5   :  { %v183_v16 = vpop.f32.mrb[0].mxu1 }
  0xe6   :  { %v415_v15 = vpop.f32.mrb[0].mxu0  ;;  %v320_v18 = vpop.f32.mrb[1].mxu1 }
  0xe7   :  { %v417_v17 = vpop.f32.mrb[1].mxu0  ;;  %v186_v21 = vpop.f32.mrb[2].mxu1 }
  0xe8   :  { %v419_v19 = vpop.f32.mrb[2].mxu0  ;;  %v190_v20 = vadd.f32 %v417_v17, %v415_v15  ;;  %v321_v24 = vpop.f32.mrb[3].mxu1 }
  0xe9   :  { %v423_v22 = vpop.f32.mrb[3].mxu0 }
  0xea   :  { %v194_v23 = vadd.f32 %v423_v22, %v419_v19  ;;  %v191_v25 = vadd.f32 %v190_v20, %v183_v16 }
  0xec   :  { %192 = vadd.xlane.f32.xlu0 %v191_v25  ;;  %v195_v26 = vadd.f32 %v194_v23, %v186_v21 }
  0xf0   :  { %196 = vadd.xlane.f32.xlu0 %v195_v26 }
 0x179   :  { %v193_v27 = vpop.xlane.xlu0 %192 }
 0x17a   :  { %v198_v28 = vmul.f32 0.008928572, %v193_v27 }
 0x17c   :  { %v200_v29 = vsub.f32 %v415_v15, %v198_v28  ;;  %v201_v30 = vsub.f32 %v417_v17, %v198_v28  ;;  %v202_v31 = vsub.f32 %v183_v16, %v198_v28  ;;  %v220_v47 = vmul.f32 %v198_v28, %v198_v28 }
 0x17d   :  { %v197_v32 = vpop.xlane.xlu0 %196 }
 0x17e   :  { %v199_v33 = vmul.f32 0.008928572, %v197_v32  ;;  %v206_v34 = vmul.f32 %v200_v29, %v200_v29  ;;  %v207_v35 = vmul.f32 %v201_v30, %v201_v30  ;;  %v208_v36 = vmul.f32 %v202_v31, %v202_v31 }
 0x17f   :  { %v222_v48 = vmul.f32 272.0, %v220_v47 }
 0x180   :  { %v212_v37 = vadd.f32 %v207_v35, %v206_v34  ;;  %v203_v38 = vsub.f32 %v419_v19, %v199_v33  ;;  %v204_v39 = vsub.f32 %v423_v22, %v199_v33  ;;  %v205_v40 = vsub.f32 %v186_v21, %v199_v33 }
 0x181   :  { %v221_v49 = vmul.f32 %v199_v33, %v199_v33 }
 0x182   :  { %v213_v41 = vadd.f32 %v212_v37, %v208_v36  ;;  %v209_v42 = vmul.f32 %v203_v38, %v203_v38  ;;  %v210_v43 = vmul.f32 %v204_v39, %v204_v39  ;;  %v211_v44 = vmul.f32 %v205_v40, %v205_v40 }
 0x183   :  { %v223_v53 = vmul.f32 272.0, %v221_v49 }
 0x184   :  { %214 = vadd.xlane.f32.xlu1 %v213_v41  ;;  %v216_v45 = vadd.f32 %v210_v43, %v209_v42 }
 0x186   :  { %v217_v46 = vadd.f32 %v216_v45, %v211_v44 }
 0x188   :  { %218 = vadd.xlane.f32.xlu1 %v217_v46 }
 0x211   :  { %v215_v50 = vpop.xlane.xlu1 %214 }
 0x212   :  { %v224_v51 = vsub.f32 %v215_v50, %v222_v48 }
 0x214   :  { %v226_v52 = vmul.f32 0.008928572, %v224_v51 }
 0x215   :  { %v219_v54 = vpop.xlane.xlu1 %218 }
 0x216   :  { %v228_v55 = vmax.f32 %v226_v52, 0.0  ;;  %v225_v56 = vsub.f32 %v219_v54, %v223_v53 }
 0x218   :  { %v232_v57 = vadd.f32 1e-05, %v228_v55  ;;  %v227_v58 = vmul.f32 0.008928572, %v225_v56 }
 0x21a   :  { %347 = vrsqrt.f32 %v232_v57  ;;  %v229_v59 = vmax.f32 %v227_v58, 0.0 }
 0x21c   :  { %v233_v60 = vadd.f32 1e-05, %v229_v59 }
 0x21e   :  { %349 = vrsqrt.f32 %v233_v60 }
 0x224   :  { %v348_v63 = vpop.eup %347 }
 0x225   :  { %v236_v0 = vmul.f32 %v348_v63, %v230_v62 }
 0x227   :  { %v238_v2 = vmul.f32 %v236_v0, %v198_v28 }
 0x228   :  { %v350_v3 = vpop.eup %349 }
 0x229   :  { %242 = vrot.lane.b32.xlu0 %v238_v2, %s355_s13  ;;  %v237_v4 = vmul.f32 %v350_v3, %v231_v1 }
 0x22b   :  { %v239_v5 = vmul.f32 %v237_v4, %v199_v33 }
 0x22d   :  { %244 = vrot.lane.b32.xlu1 %v239_v5, %s355_s13 }
 0x231   :  { %252 = vperm.xlu1 %327, %v236_v0  }
 0x235   :  { %257 = vperm.xlu1 %327, %v237_v4  }
 0x239   :  { %329 = vset.pattern.permute.xlu1 %v354_v61 }
 0x29b   :  { %v243_v6 = vpop.permute.xlu0 %242 }
 0x29c   :  { %v248_v7 = vsub.f32 %v230_v62, %v243_v6 }
 0x29e   :  { %266 = vperm.xlu0 %328, %v248_v7  }
 0x29f   :  { %v245_v8 = vpop.permute.xlu1 %244 }
 0x2a0   :  { %v249_v9 = vsub.f32 %v231_v1, %v245_v8 }
 0x2a2   :  { %271 = vperm.xlu1 %329, %v249_v9  }
 0x2b0   :  { %v253_v10 = vpop.permute.xlu1 %252 }
 0x2b1   :  { %v260_v11 = vmul.f32 %v253_v10, %v415_v15  ;;  %v261_v12 = vmul.f32 %v253_v10, %v417_v17 }
 0x2b4   :  { %v258_v13 = vpop.permute.xlu1 %257 }
 0x2b5   :  { %v262_v20 = vmul.f32 %v258_v13, %v419_v19  ;;  %v263_v21 = vmul.f32 %v258_v13, %v423_v22 }
 0x31d   :  { %v267_v14 = vpop.permute.xlu0 %266 }
 0x31e   :  { %v274_v16 = vadd.f32 %v267_v14, %v260_v11  ;;  %v275_v18 = vadd.f32 %v267_v14, %v261_v12 }
 0x320   :  { %v278_v23 = vmax.f32 %v274_v16, 0.0  ;;  %v279_v24 = vmax.f32 %v275_v18, 0.0 }
 0x321   :  { %v272_v25 = vpop.permute.xlu1 %271 }
 0x322   :  { %v282_v26 = vmax.f32 %v278_v23, %v279_v24  ;;  %v276_v27 = vadd.f32 %v272_v25, %v262_v20  ;;  %v277_v28 = vadd.f32 %v272_v25, %v263_v21 }
 0x324   :  { %284 = vst [vmem:[%s450_s3] sm:$0xff] %v282_v26  ;;  %v280_v15 = vmax.f32 %v276_v27, 0.0  ;;  %v281_v17 = vmax.f32 %v277_v28, 0.0 }
 0x326   :  { %v283_v29 = vmax.f32 %v280_v15, %v281_v17 }
 0x328   :  { %285 = vst [vmem:[%s450_s3 + $0x8] sm:$0xff] %v283_v29 }

// kernel: _lambda_.7
= control target key start
LH: loop header
LB: loop body
LE: loop exit
PB: predicated region body
PF: predicated region fallthrough
CT: control target
= control target key end

     0   :  { %v478_v1 = vmov 0.0   ;;  %vm479_vm0 = vmmov 0   ;;  %s600_s0 = inlined_call_operand.vmem [shape: bf16[2,128], index: 0, kind: input, shape index: {}]   ;;  %s601_s1 = inlined_call_operand.vmem [shape: bf16[128,32], index: 1, kind: input, shape index: {}]   ;;  %s602_s2 = inlined_call_operand.vmem [shape: bf16[3,32,32], index: 2, kind: input, shape index: {}]   ;;  %s603_s3 = inlined_call_operand.vmem [shape: f32[4,32], index: 3, kind: input, shape index: {}]   ;;  %s604_s4 = inlined_call_operand.hbm [shape: f32[2,32], index: 4, kind: output, shape index: {}]  }
   0x1   :  { %v440_v0 = vld [vmem:[%s601_s1] sm:$0xff]   ;;  %393 = vmatprep.subr.bf16.mxu0 %v478_v1  ;;  %413 = vmatprep.subr.bf16.mxu1 %v478_v1  ;;  %v441_v2 = vld [vmem:[%s601_s1 + $0x8] sm:$0xff]   ;;  %v442_v3 = vld [vmem:[%s601_s1 + $0x10] sm:$0xff]  }
   0x2   :  { %394 = vmatpush3.bf16.msra.mxu0 %v440_v0  ;;  %409 = vmatprep.mubr.msk.bf16.mxu0 %vm479_vm0, %v478_v1  ;;  %v443_v4 = vld [vmem:[%s601_s1 + $0x18] sm:$0xff]  }
   0x3   :  { %395 = vmatprep.subr.bf16.mxu0 %v478_v1  ;;  %417 = vmatprep.mubr.msk.bf16.mxu1 %vm479_vm0, %v478_v1 }
   0x6   :  { %396 = vmatpush3.bf16.msra.mxu0 %v441_v2 }
   0x7   :  { %397 = vmatprep.subr.bf16.mxu0 %v478_v1 }
   0xa   :  { %398 = vmatpush3.bf16.msra.mxu0 %v442_v3 }
   0xb   :  { %399 = vmatprep.subr.bf16.mxu0 %v478_v1 }
   0xc   :  { %9 = vsyncpa [#allocation3], 0  ;;  %v444_v5 = vld [vmem:[%s601_s1 + $0x20] sm:$0xff]   ;;  %v445_v6 = vld [vmem:[%s601_s1 + $0x28] sm:$0xff]   ;;  %vm152_vm1 = vcmask 261120   ;;  %s480_s25 = smov [#allocation2]  }
   0xd   :  { %v446_v7 = vld [vmem:[%s601_s1 + $0x30] sm:$0xff]   ;;  %v447_v8 = vld [vmem:[%s601_s1 + $0x38] sm:$0xff]   ;;  %v19_v9 = vld [vmem:[%s600_s0] sm:$0x1]  ;;  %vm330_vm2 = vcmask 254976  }
   0xe   :  { %400 = vmatpush3.bf16.msra.mxu0 %v443_v4  ;;  %v448_v10 = vld [vmem:[%s602_s2] sm:$0xff]   ;;  %v449_v11 = vld [vmem:[%s602_s2 + $0x8] sm:$0xff]   ;;  %v450_v19 = vld [vmem:[%s602_s2 + $0x10] sm:$0xff]  }
   0xf   :  { %401 = vmatprep.subr.bf16.mxu0 %v478_v1  ;;  %414 = vmatpush3.bf16.msra.mxu1 %v448_v10  ;;  %v346_v12 = vld [vmem:[%s603_s3] ss:$0 sm:$0xff]  ;;  %v451_v21 = vld [vmem:[%s602_s2 + $0x18] sm:$0xff]   ;;  %v355_v22 = vld [vmem:[%s603_s3 + $0x1] ss:$0 sm:$0xff] }
  0x10   :  { %415 = vmatprep.subr.bf16.mxu1 %v478_v1  ;;  %v452_v29 = vld [vmem:[%s602_s2 + $0x20] sm:$0xff]   ;;  %v453_v31 = vld [vmem:[%s602_s2 + $0x28] sm:$0xff]   ;;  %s338_s2 = sshll.u32 %s480_s25, 4  ;;  %s339_s2 = int_to_ptr.vmem [resolvable:$true] %s338_s2 }
  0x11   :  { %v363_v32 = vld [vmem:[%s603_s3 + $0x2] ss:$0 sm:$0xff]  ;;  %v371_v40 = vld [vmem:[%s603_s3 + $0x3] ss:$0 sm:$0xff]  ;;  %s454_s26 = scalar_lea.vmem %s339_s2, 32  ;;  %p459_p1 = scmp.lt.s32.totalorder %s339_s2, %s339_s2 }
  0x12   :  { %402 = vmatpush3.bf16.msra.mxu0 %v444_v5  ;;  %p455_p0 = scmp.ne.s32.totalorder %s339_s2, %s454_s26  ;;  %p460_p2 = scmp.lt.s32.totalorder %s454_s26, %s454_s26 }
  0x13   :  { %403 = vmatprep.subr.bf16.mxu0 %v478_v1  ;;  %416 = vmatpush3.bf16.msra.mxu1 %v449_v11 }
  0x14   :  { %421 = vmatprep.subr.bf16.mxu1 %v478_v1  ;;  %p461_p3 = por %p460_p2, %p459_p1 }
  0x16   :  { %404 = vmatpush3.bf16.msra.mxu0 %v445_v6  ;;  %p462_p4 = pnand %p461_p3, %p455_p0 }
  0x17   :  { %405 = vmatprep.subr.bf16.mxu0 %v478_v1 }
  0x1a   :  { %406 = vmatpush3.bf16.msra.mxu0 %v446_v7 }
  0x1b   :  { %407 = vmatprep.subr.bf16.mxu0 %v478_v1 }
  0x1e   :  { %408 = vmatpush3.bf16.msra.mxu0 %v447_v8 }
  0x21   :  { %410 = vmatmul.mubr.bf16.vlgmr.msra.gmra.mrb[0].mxu0 %v19_v9 }
  0xf4   :  { %v123_v13 = vpop.f32.mrb[0].mxu0 }
  0xf5   :  { %v124_v14 = vadd.f32 %v346_v12, %v123_v13  ;;  %v411_v15 = vpop.f32.mrb[1].mxu0 }
  0xf6   :  { %v126_v16 = vpop.f32.mrb[2].mxu0 }
  0xf7   :  { %v129_v17 = vmax.f32 %v124_v14, 0.0  ;;  %v412_v18 = vpop.f32.mrb[3].mxu0 }
  0xf9   :  { %v130_v20 = vpack.c.bf16 %v129_v17, %v129_v17 }
  0xfb   :  { %418 = vmatmul.mubr.msk.bf16.vlgmr.msra.gmra.mrb[0].mxu1 %vm152_vm1, %v130_v20 }
  0xfc   :  { %422 = vmatpush3.bf16.msra.mxu1 %v450_v19  ;;  %425 = vmatprep.mubr.msk.bf16.mxu1 %vm479_vm0, %v478_v1 }
  0xfd   :  { %423 = vmatprep.subr.bf16.mxu1 %v478_v1 }
 0x100   :  { %424 = vmatpush3.bf16.msra.mxu1 %v451_v21 }
 0x101   :  { %429 = vmatprep.subr.bf16.mxu1 %v478_v1 }
 0x1ce   :  { %v190_v23 = vpop.f32.mrb[0].mxu1 }
 0x1cf   :  { %v191_v24 = vadd.f32 %v355_v22, %v190_v23  ;;  %v419_v25 = vpop.f32.mrb[1].mxu1 }
 0x1d0   :  { %v193_v26 = vpop.f32.mrb[2].mxu1 }
 0x1d1   :  { %v196_v27 = vmax.f32 %v191_v24, 0.0  ;;  %v420_v28 = vpop.f32.mrb[3].mxu1 }
 0x1d3   :  { %v197_v30 = vpack.c.bf16 %v196_v27, %v196_v27 }
 0x1d5   :  { %426 = vmatmul.mubr.msk.bf16.vlgmr.msra.gmra.mrb[4].mxu1 %vm152_vm1, %v197_v30 }
 0x1d6   :  { %430 = vmatpush3.bf16.msra.mxu1 %v452_v29  ;;  %433 = vmatprep.mubr.msk.bf16.mxu1 %vm479_vm0, %v478_v1 }
 0x1d7   :  { %431 = vmatprep.subr.bf16.mxu1 %v478_v1 }
 0x1da   :  { %432 = vmatpush3.bf16.msra.mxu1 %v453_v31 }
 0x2a8   :  { %v257_v33 = vpop.f32.mrb[4].mxu1 }
 0x2a9   :  { %v258_v34 = vadd.f32 %v363_v32, %v257_v33  ;;  %v427_v35 = vpop.f32.mrb[5].mxu1 }
 0x2aa   :  { %v260_v36 = vpop.f32.mrb[6].mxu1 }
 0x2ab   :  { %v263_v37 = vmax.f32 %v258_v34, 0.0  ;;  %v428_v38 = vpop.f32.mrb[7].mxu1 }
 0x2ad   :  { %v264_v39 = vpack.c.bf16 %v263_v37, %v263_v37 }
 0x2af   :  { %434 = vmatmul.mubr.msk.bf16.vlgmr.msra.gmra.mrb[8].mxu1 %vm152_vm1, %v264_v39 }
 0x382   :  { %v324_v41 = vpop.f32.mrb[8].mxu1 }
 0x383   :  { %v325_v42 = vadd.f32 %v371_v40, %v324_v41  ;;  %v435_v43 = vpop.f32.mrb[9].mxu1 }
 0x384   :  { %v327_v44 = vpop.f32.mrb[10].mxu1 }
 0x385   :  { %v436_v45 = vpop.f32.mrb[11].mxu1  ;;  %331 = vst.msk [vmem:[#allocation2] sm:$0x3] %vm330_vm2, %v325_v42 }
 0x386   :  { %465 = shalt.err (!%p462_p4)
}
 0x387   :  { %s466_s3 = scalar_lea.hbm %s604_s4, 32 }
 0x388   :  { %p467_p5 = scmp.ne.s32.totalorder %s604_s4, %s466_s3  ;;  %p470_p6 = scmp.lt.u32.totalorder %s466_s3, %s604_s4 }
 0x38a   :  { %p472_p7 = pnand %p470_p6, %p467_p5 }
 0x38c   :  { %475 = shalt.err (!%p472_p7)
}
 0x38d   :  { %341 = dma.vmem_to_hbm [thread:$0]  %s339_s2, 32, %s604_s4, [#allocation3]  }
 0x38e   :  { %476 = dma.done.wait [#allocation3], 32  }
 0x38f   :  { %477 = vsyncadd [#allocation3], 4294967264 }
 0x390   :  { %345 = vsyncpa [#allocation3], 1 }

// kernel: _lambda_.6
= control target key start
LH: loop header
LB: loop body
LE: loop exit
PB: predicated region body
PF: predicated region fallthrough
CT: control target
= control target key end

     0   :  { %v306_v1 = vmov 0   ;;  %v307_v52 = vmov 1   ;;  %s308_s21 = smov 1   ;;  %s412_s1 = inlined_call_operand.vmem [shape: bf16[128,256], index: 1, kind: input, shape index: {}]   ;;  %s413_s0 = inlined_call_operand.vmem [shape: bf16[16,128], index: 0, kind: input, shape index: {}]   ;;  %s414_s2 = inlined_call_operand.vmem [shape: f32[16,2], index: 2, kind: input, shape index: {}]   ;;  %s415_s3 = inlined_call_operand.vmem [shape: f32[16,128], index: 3, kind: output, shape index: {}]  }
   0x1   :  { %v277_v0 = vld [vmem:[%s412_s1 + $0x4] ss:$8 sps:$4 sm:$0xff]   ;;  %151 = vmatprep.mubr.bf16.mxu0 %v306_v1  ;;  %274 = vset.pattern.permute.xlu1 %v306_v1  ;;  %v279_v2 = vld [vmem:[%s412_s1] ss:$8 sps:$4 sm:$0xff]   ;;  %v280_v3 = vld [vmem:[%s412_s1 + $0x14] ss:$8 sps:$4 sm:$0xff]  }
   0x2   :  { %119 = vmatprep.subr.bf16.mxu0 %v277_v0  ;;  %v282_v4 = vld [vmem:[%s412_s1 + $0x10] ss:$8 sps:$4 sm:$0xff]   ;;  %v283_v5 = vld [vmem:[%s412_s1 + $0x24] ss:$8 sps:$4 sm:$0xff]   ;;  %v285_v6 = vld [vmem:[%s412_s1 + $0x20] ss:$8 sps:$4 sm:$0xff]   ;;  %275 = vset.pattern.permute.xlu0 %v307_v52 }
   0x3   :  { %120 = vmatpush1.bf16.msra.mxu0 %v279_v2  ;;  %v286_v7 = vld [vmem:[%s412_s1 + $0x34] ss:$8 sps:$4 sm:$0xff]   ;;  %v288_v8 = vld [vmem:[%s412_s1 + $0x30] ss:$8 sps:$4 sm:$0xff]   ;;  %v289_v9 = vld [vmem:[%s412_s1 + $0x44] ss:$8 sps:$4 sm:$0xff]  }
   0x4   :  { %121 = vmatprep.subr.bf16.mxu0 %v280_v3  ;;  %v291_v10 = vld [vmem:[%s412_s1 + $0x40] ss:$8 sps:$4 sm:$0xff]   ;;  %v292_v11 = vld [vmem:[%s412_s1 + $0x54] ss:$8 sps:$4 sm:$0xff]   ;;  %v294_v12 = vld [vmem:[%s412_s1 + $0x50] ss:$8 sps:$4 sm:$0xff]  }
   0x5   :  { %v295_v13 = vld [vmem:[%s412_s1 + $0x64] ss:$8 sps:$4 sm:$0xff]   ;;  %v297_v14 = vld [vmem:[%s412_s1 + $0x60] ss:$8 sps:$4 sm:$0xff]   ;;  %v298_v15 = vld [vmem:[%s412_s1 + $0x74] ss:$8 sps:$4 sm:$0xff]  }
   0x6   :  { %v300_v16 = vld [vmem:[%s412_s1 + $0x70] ss:$8 sps:$4 sm:$0xff]   ;;  %v301_v17 = vld [vmem:[%s413_s0] sm:$0xff]   ;;  %v195_v56 = vld [vmem:[%s414_s2 + $0x8] sm:$0xff] }
   0x7   :  { %122 = vmatpush1.bf16.msra.mxu0 %v282_v4  ;;  %v194_v53 = vld [vmem:[%s414_s2] sm:$0xff] }
   0x8   :  { %123 = vmatprep.subr.bf16.mxu0 %v283_v5 }
   0xb   :  { %124 = vmatpush1.bf16.msra.mxu0 %v285_v6 }
   0xc   :  { %125 = vmatprep.subr.bf16.mxu0 %v286_v7 }
   0xf   :  { %126 = vmatpush1.bf16.msra.mxu0 %v288_v8 }
  0x10   :  { %127 = vmatprep.subr.bf16.mxu0 %v289_v9 }
  0x13   :  { %128 = vmatpush1.bf16.msra.mxu0 %v291_v10 }
  0x14   :  { %129 = vmatprep.subr.bf16.mxu0 %v292_v11 }
  0x17   :  { %130 = vmatpush1.bf16.msra.mxu0 %v294_v12 }
  0x18   :  { %131 = vmatprep.subr.bf16.mxu0 %v295_v13 }
  0x1b   :  { %132 = vmatpush1.bf16.msra.mxu0 %v297_v14 }
  0x1c   :  { %133 = vmatprep.subr.bf16.mxu0 %v298_v15 }
  0x1f   :  { %134 = vmatpush1.bf16.msra.mxu0 %v300_v16 }
  0x22   :  { %152 = vmatmul.mubr.bf16.vlgmr.msra.gmra.mrb[0].mxu0 %v301_v17 }
  0xf5   :  { %v380_v18 = vpop.f32.mrb[0].mxu0 }
  0xf6   :  { %v382_v19 = vpop.f32.mrb[1].mxu0 }
  0xf7   :  { %v384_v20 = vpop.f32.mrb[2].mxu0  ;;  %v162_v21 = vadd.f32 %v382_v19, %v380_v18 }
  0xf8   :  { %v388_v22 = vpop.f32.mrb[3].mxu0 }
  0xf9   :  { %163 = vadd.xlane.f32.xlu0 %v162_v21  ;;  %v165_v23 = vadd.f32 %v388_v22, %v384_v20 }
  0xfd   :  { %166 = vadd.xlane.f32.xlu0 %v165_v23 }
 0x186   :  { %v164_v24 = vpop.xlane.xlu0 %163 }
 0x187   :  { %v168_v25 = vmul.f32 0.125, %v164_v24 }
 0x189   :  { %v170_v26 = vsub.f32 %v380_v18, %v168_v25  ;;  %v171_v27 = vsub.f32 %v382_v19, %v168_v25  ;;  %v184_v38 = vmul.f32 %v168_v25, %v168_v25 }
 0x18a   :  { %v167_v28 = vpop.xlane.xlu0 %166 }
 0x18b   :  { %v169_v29 = vmul.f32 0.125, %v167_v28  ;;  %v174_v30 = vmul.f32 %v170_v26, %v170_v26  ;;  %v175_v31 = vmul.f32 %v171_v27, %v171_v27  ;;  %v186_v39 = vmul.f32 248.0, %v184_v38 }
 0x18d   :  { %v178_v32 = vadd.f32 %v175_v31, %v174_v30  ;;  %v172_v33 = vsub.f32 %v384_v20, %v169_v29  ;;  %v173_v34 = vsub.f32 %v388_v22, %v169_v29  ;;  %v185_v40 = vmul.f32 %v169_v29, %v169_v29 }
 0x18f   :  { %179 = vadd.xlane.f32.xlu1 %v178_v32  ;;  %v176_v35 = vmul.f32 %v172_v33, %v172_v33  ;;  %v177_v36 = vmul.f32 %v173_v34, %v173_v34  ;;  %v187_v44 = vmul.f32 248.0, %v185_v40 }
 0x191   :  { %v181_v37 = vadd.f32 %v177_v36, %v176_v35 }
 0x193   :  { %182 = vadd.xlane.f32.xlu1 %v181_v37 }
 0x21c   :  { %v180_v41 = vpop.xlane.xlu1 %179 }
 0x21d   :  { %v188_v42 = vsub.f32 %v180_v41, %v186_v39 }
 0x21f   :  { %v190_v43 = vmul.f32 0.125, %v188_v42 }
 0x220   :  { %v183_v45 = vpop.xlane.xlu1 %182 }
 0x221   :  { %v192_v46 = vmax.f32 %v190_v43, 0.0  ;;  %v189_v47 = vsub.f32 %v183_v45, %v187_v44 }
 0x223   :  { %v196_v48 = vadd.f32 1e-05, %v192_v46  ;;  %v191_v49 = vmul.f32 0.125, %v189_v47 }
 0x225   :  { %302 = vrsqrt.f32 %v196_v48  ;;  %v193_v50 = vmax.f32 %v191_v49, 0.0 }
 0x227   :  { %v197_v51 = vadd.f32 1e-05, %v193_v50 }
 0x229   :  { %304 = vrsqrt.f32 %v197_v51 }
 0x22f   :  { %v303_v54 = vpop.eup %302 }
 0x230   :  { %v200_v55 = vmul.f32 %v303_v54, %v194_v53 }
 0x232   :  { %v202_v57 = vmul.f32 %v200_v55, %v168_v25 }
 0x233   :  { %v305_v58 = vpop.eup %304 }
 0x234   :  { %206 = vrot.lane.b32.xlu0 %v202_v57, %s308_s21  ;;  %v201_v59 = vmul.f32 %v305_v58, %v195_v56 }
 0x236   :  { %v203_v60 = vmul.f32 %v201_v59, %v169_v29 }
 0x238   :  { %208 = vrot.lane.b32.xlu1 %v203_v60, %s308_s21 }
 0x23c   :  { %216 = vperm.xlu1 %274, %v200_v55  }
 0x240   :  { %221 = vperm.xlu1 %274, %v201_v59  }
 0x244   :  { %276 = vset.pattern.permute.xlu1 %v307_v52 }
 0x2a6   :  { %v207_v61 = vpop.permute.xlu0 %206 }
 0x2a7   :  { %v212_v62 = vsub.f32 %v194_v53, %v207_v61 }
 0x2a9   :  { %230 = vperm.xlu0 %275, %v212_v62  }
 0x2aa   :  { %v209_v63 = vpop.permute.xlu1 %208 }
 0x2ab   :  { %v213_v0 = vsub.f32 %v195_v56, %v209_v63 }
 0x2ad   :  { %235 = vperm.xlu1 %276, %v213_v0  }
 0x2bb   :  { %v217_v1 = vpop.permute.xlu1 %216 }
 0x2bc   :  { %v224_v2 = vmul.f32 %v217_v1, %v380_v18  ;;  %v225_v3 = vmul.f32 %v217_v1, %v382_v19 }
 0x2bf   :  { %v222_v4 = vpop.permute.xlu1 %221 }
 0x2c0   :  { %v226_v8 = vmul.f32 %v222_v4, %v384_v20  ;;  %v227_v9 = vmul.f32 %v222_v4, %v388_v22 }
 0x328   :  { %v231_v5 = vpop.permute.xlu0 %230 }
 0x329   :  { %v238_v6 = vadd.f32 %v231_v5, %v224_v2  ;;  %v239_v7 = vadd.f32 %v231_v5, %v225_v3 }
 0x32b   :  { %v242_v10 = vmax.f32 %v238_v6, 0.0  ;;  %v243_v11 = vmax.f32 %v239_v7, 0.0 }
 0x32c   :  { %v236_v12 = vpop.permute.xlu1 %235 }
 0x32d   :  { %v246_v13 = vmax.f32 %v242_v10, %v243_v11  ;;  %v240_v14 = vadd.f32 %v236_v12, %v226_v8  ;;  %v241_v15 = vadd.f32 %v236_v12, %v227_v9 }
 0x32f   :  { %248 = vst [vmem:[%s415_s3] sm:$0xff] %v246_v13  ;;  %v244_v16 = vmax.f32 %v240_v14, 0.0  ;;  %v245_v17 = vmax.f32 %v241_v15, 0.0 }
 0x331   :  { %v247_v18 = vmax.f32 %v244_v16, %v245_v17 }
 0x333   :  { %249 = vst [vmem:[%s415_s3 + $0x8] sm:$0xff] %v247_v18 }

</bundles_post_ra>
